<compile_context>
chip_gen: v5e
topology: v5e:2x2
jax: 0.10.0
libtpu: 0.0.40
codegen_flags: <defaults>
</compile_context>

<pallas_src>
import jax
import jax.numpy as jnp
from jax import lax
from jax.experimental import pallas as pl
from jax.experimental.pallas import tpu as pltpu

L = 66           # sequence length implied by Linear(4224, 2) with 64 channels
LP = 72          # per-example padded rows: multiple of 8/16, >= L + 2*PAD
C = 64           # channels
K = 5            # conv kernel size
PAD = 2          # 'same' padding for k=5, stride=1
NUM_RES = 5
NEG_SLOPE = 0.01   # torch.nn.LeakyReLU default
EPS = 1e-5         # torch.nn.BatchNorm1d default


def _leaky_relu(x):
    return jnp.where(x >= 0, x, NEG_SLOPE * x)


def rescnn_kernel(xcol_ref, w1_ref, wr_ref, b1_ref, br_ref, valid_ref, wl_ref,
                  bl_ref, out_ref):
    """Fused ResCNN_t forward, batch folded into the row (M) dimension.

    xcol_ref  : (B*LP, K)            im2col'd 1-channel input (pad rows zero), f32
    w1_ref    : (K, C)               layer-1 conv weight, BN scale folded, f32
    wr_ref    : (NUM_RES, K*C, C)    residual conv weights, BN-scale folded, bf16
    b1_ref    : (1, C)               layer-1 folded bias, f32
    br_ref    : (NUM_RES, 1, C)      residual folded biases, f32
    valid_ref : (B*LP, 1)            1 for real rows, 0 for pad rows, f32
    wl_ref    : (2, LP, C)           classifier weight, channels-last, pad rows zero
    bl_ref    : (1, 2)               classifier bias
    out_ref   : (B, 2)               logits
    """
    BLP = xcol_ref.shape[0]
    B = out_ref.shape[0]

    # Row-validity mask, broadcast once (hoisted out of the layer loop).
    validC = jnp.broadcast_to(valid_ref[...], (BLP, C))

    # ---- layer 1: Conv1d(1, 64, 5, 'same') + folded BN + LeakyReLU --------
    # Contraction depth is only 5 -> 5 VPU broadcast-MACs, no MXU weight load.
    xcol = xcol_ref[...]
    w1 = w1_ref[...]
    acc = xcol[:, 0:1] * w1[0:1, :]
    for k in range(1, K):
        acc = acc + xcol[:, k:k + 1] * w1[k:k + 1, :]
    # Force pad rows to exactly zero: they act as the conv zero-padding for
    # every following layer (this is the invariant the rolls rely on).
    feat = _leaky_relu(acc + b1_ref[...]) * validC

    # ---- 5 residual blocks: feat = conv_bn_lrelu(feat) + feat -------------
    def res_layer(i, feat):
        wri = wr_ref[i]                                   # (K*C, C) bf16
        acc = None
        for k in range(K):
            d = k - PAD
            # out[p] = feat[p + d]; wrapped / cross-example reads land on the
            # zeroed pad rows, giving exact 'same'-padding semantics.
            sh = feat if d == 0 else pltpu.roll(feat, shift=(-d) % BLP, axis=0)
            t = jnp.dot(sh.astype(jnp.bfloat16), wri[k * C:(k + 1) * C, :],
                        preferred_element_type=jnp.float32)
            acc = t if acc is None else acc + t
        y = _leaky_relu(acc + br_ref[i])
        # Re-zero pad rows (they accumulate junk from valid neighbours) and
        # apply the residual; valid rows get y + feat as in the module.
        return y * validC + feat

    feat = lax.fori_loop(0, NUM_RES, res_layer, feat)

    # ---- classifier: Flatten + Linear(4224, 2) -----------------------------
    # Batch-invariant weights; per-example contraction = elementwise mul +
    # lane/sublane reduce over the aligned (LP, C) slab (pad rows are zero on
    # both feat and wl, so they contribute nothing).
    wl0 = wl_ref[0]
    wl1 = wl_ref[1]
    rows = []
    for b in range(B):
        fb = feat[b * LP:(b + 1) * LP, :]                 # aligned static slice
        s0 = jnp.sum(jnp.sum(fb * wl0, axis=1, keepdims=True), axis=0,
                     keepdims=True)
        s1 = jnp.sum(jnp.sum(fb * wl1, axis=1, keepdims=True), axis=0,
                     keepdims=True)
        rows.append(jnp.concatenate([s0, s1], axis=1))    # (1, 2)
    out_ref[...] = jnp.concatenate(rows, axis=0) + bl_ref[...]


def _fold_params(p):
    """Fold eval-mode BN scale into conv weights; fold conv bias + BN shift."""
    sc = [p['gamma'][i] / jnp.sqrt(p['var'][i] + EPS) for i in range(NUM_RES + 1)]
    bias = [(p['conv_b'][i] - p['mean'][i]) * sc[i] + p['beta'][i]
            for i in range(NUM_RES + 1)]
    b1 = bias[0].reshape(1, C)
    br = jnp.stack(bias[1:], axis=0).reshape(NUM_RES, 1, C)
    # layer-1 conv weight (Cout, 1, K) -> (K, Cout), BN scale folded, f32
    w1 = jnp.transpose(p['conv_w'][0][:, 0, :], (1, 0)) * sc[0][None, :]
    # residual conv weights (Cout, Cin, K) -> (K, Cin, Cout) -> (K*Cin, Cout),
    # BN scale folded, cast to bf16 (MXU operands)
    wr = jnp.stack([
        (jnp.transpose(p['conv_w'][i + 1], (2, 1, 0))
         * sc[i + 1][None, None, :]).reshape(K * C, C)
        for i in range(NUM_RES)], axis=0).astype(jnp.bfloat16)   # (5, K*C, C)
    return w1, wr, b1, br


def rescnn_t_forward(x, p):
    """x: (B, L) float32 — ResCNN_t applies x.unsqueeze(1) internally."""
    B = x.shape[0]
    BLP = B * LP
    w1, wr, b1, br = _fold_params(p)

    # layer-1 im2col of the 1-channel input ('same' padding = 2 each side);
    # each example padded with LP-L zero rows, batch folded into rows.
    xp = jnp.pad(x, ((0, 0), (PAD, PAD)))
    xcol = jnp.stack([xp[:, k:k + L] for k in range(K)], axis=-1)   # (B, L, K)
    xcol = jnp.pad(xcol, ((0, 0), (0, LP - L), (0, 0))).reshape(BLP, K)

    # classifier weight (2, C*L), PyTorch flatten order (c*L + l)
    #   -> channels-last (2, L, C) -> zero-pad rows -> (2, LP, C)
    wl = jnp.transpose(p['lin_w'].reshape(2, C, L), (0, 2, 1))
    wl = jnp.pad(wl, ((0, 0), (0, LP - L), (0, 0)))
    bl = p['lin_b'].reshape(1, 2)

    # per-row validity: 1 for the L real rows of each example, 0 for pad rows
    valid = (jnp.arange(BLP) % LP < L).astype(jnp.float32).reshape(BLP, 1)

    vmem = pl.BlockSpec(memory_space=pltpu.MemorySpace.VMEM)
    return pl.pallas_call(
        rescnn_kernel,
        out_shape=jax.ShapeDtypeStruct((B, 2), jnp.float32),
        in_specs=[vmem] * 8,
        out_specs=vmem,
    )(xcol, w1, wr, b1, br, valid, wl, bl)


# ----------------- deterministic parameter construction -----------------
def init_params(key):
    keys = iter(jax.random.split(key, 40))

    def nrm(shape, scale=0.05):
        return scale * jax.random.normal(next(keys), shape, jnp.float32)

    p = {'conv_w': [], 'conv_b': [], 'gamma': [], 'beta': [],
         'mean': [], 'var': []}
    in_ch = [1] + [C] * NUM_RES
    for i in range(NUM_RES + 1):
        p['conv_w'].append(nrm((C, in_ch[i], K)))
        p['conv_b'].append(nrm((C,)))
        p['gamma'].append(1.0 + 0.1 * jax.random.normal(next(keys), (C,), jnp.float32))
        p['beta'].append(0.1 * jax.random.normal(next(keys), (C,), jnp.float32))
        p['mean'].append(0.1 * jax.random.normal(next(keys), (C,), jnp.float32))
        p['var'].append(1.0 + 0.1 * jax.random.uniform(next(keys), (C,), jnp.float32))
    p['lin_w'] = nrm((2, C * L))
    p['lin_b'] = nrm((2,))
    return p


# ----------------- pure-JAX references -----------------
def reference_forward(x, p):
    """Module semantics, pure f32 (NCL, like PyTorch)."""
    h = x[:, None, :]                                   # (B, 1, L)

    def block(h, i):
        conv = lax.conv_general_dilated(
            h, p['conv_w'][i], window_strides=(1,), padding='SAME',
            dimension_numbers=('NCH', 'OIH', 'NCH'))
        z = conv + p['conv_b'][i][None, :, None]
        y = ((z - p['mean'][i][None, :, None])
             / jnp.sqrt(p['var'][i][None, :, None] + EPS)
             * p['gamma'][i][None, :, None] + p['beta'][i][None, :, None])
        return jnp.where(y >= 0, y, NEG_SLOPE * y)

    h = block(h, 0)
    for i in range(NUM_RES):
        h = block(h, i + 1) + h
    flat = h.reshape(h.shape[0], -1)                    # PyTorch flatten (C-major)
    return flat @ p['lin_w'].T + p['lin_b'][None, :]


def matched_reference(x, p):
    """Mirror of the kernel's precision: BN folded into weights, residual conv
    operands cast to bf16 with f32 accumulation, everything else f32.  Uses an
    independent conv path (lax.conv) so it checks the kernel's roll/padding."""
    sc = [p['gamma'][i] / jnp.sqrt(p['var'][i] + EPS) for i in range(NUM_RES + 1)]
    bi = [(p['conv_b'][i] - p['mean'][i]) * sc[i] + p['beta'][i]
          for i in range(NUM_RES + 1)]
    h = x[:, None, :]                                   # (B, 1, L)
    w0 = p['conv_w'][0] * sc[0][:, None, None]
    conv = lax.conv_general_dilated(h, w0, (1,), 'SAME',
                                    dimension_numbers=('NCH', 'OIH', 'NCH'))
    h = _leaky_relu(conv + bi[0][None, :, None])
    for i in range(NUM_RES):
        wi = (p['conv_w'][i + 1] * sc[i + 1][:, None, None]).astype(jnp.bfloat16)
        conv = lax.conv_general_dilated(
            h.astype(jnp.bfloat16), wi, (1,), 'SAME',
            dimension_numbers=('NCH', 'OIH', 'NCH'),
            preferred_element_type=jnp.float32)
        h = _leaky_relu(conv + bi[i + 1][None, :, None]) + h
    flat = h.reshape(h.shape[0], -1)
    return flat @ p['lin_w'].T + p['lin_b'][None, :]


if __name__ == "__main__":
    key = jax.random.PRNGKey(0)
    pkey, xkey = jax.random.split(key)
    params = init_params(pkey)
    x = jax.random.normal(xkey, (2, L), jnp.float32)    # batch=2, seq=66

    out = jax.block_until_ready(rescnn_t_forward(x, params))
    assert out.shape == (2, 2), out.shape

    ref_matched = matched_reference(x, params)          # same precision as kernel
    ref_f32 = reference_forward(x, params)              # pure-f32 module semantics

    if not bool(jnp.allclose(out, ref_matched, rtol=1e-2, atol=1e-2)):
        raise AssertionError(
            f"kernel vs precision-matched reference mismatch:\n{out}\nvs\n{ref_matched}")
    if not bool(jnp.allclose(out, ref_f32, rtol=5e-2, atol=5e-2)):
        raise AssertionError(
            f"kernel vs f32 reference mismatch (bf16 drift too large):\n{out}\nvs\n{ref_f32}")
    print("KERNEL_OK")
</pallas_src>

<mosaic_0001>
module attributes {stable_mosaic.version = 11 : i64} {
  func.func @rescnn_kernel(%arg0: memref<144x5xf32, #tpu.memory_space<vmem>>, %arg1: memref<5x64xf32, #tpu.memory_space<vmem>>, %arg2: memref<5x320x64xbf16, #tpu.memory_space<vmem>>, %arg3: memref<1x64xf32, #tpu.memory_space<vmem>>, %arg4: memref<5x1x64xf32, #tpu.memory_space<vmem>>, %arg5: memref<144x1xf32, #tpu.memory_space<vmem>>, %arg6: memref<2x72x64xf32, #tpu.memory_space<vmem>>, %arg7: memref<1x2xf32, #tpu.memory_space<vmem>>, %arg8: memref<2x2xf32, #tpu.memory_space<vmem>>) attributes {dimension_semantics = [], scalar_prefetch = 0 : i64, scratch_operands = 0 : i64, tpu.core_type = #tpu.core_type<tc>} {
    %c0 = arith.constant 0 : index
    %c0_0 = arith.constant 0 : index
    %0 = vector.load %arg5[%c0, %c0_0] : memref<144x1xf32, #tpu.memory_space<vmem>>, vector<144x1xf32>
    %1 = vector.shape_cast %0 : vector<144x1xf32> to vector<144x1xf32>
    %2 = vector.broadcast %1 : vector<144x1xf32> to vector<144x64xf32>
    %c0_1 = arith.constant 0 : index
    %c0_2 = arith.constant 0 : index
    %3 = vector.load %arg0[%c0_1, %c0_2] : memref<144x5xf32, #tpu.memory_space<vmem>>, vector<144x5xf32>
    %c0_3 = arith.constant 0 : index
    %c0_4 = arith.constant 0 : index
    %4 = vector.load %arg1[%c0_3, %c0_4] : memref<5x64xf32, #tpu.memory_space<vmem>>, vector<5x64xf32>
    %5 = vector.extract_strided_slice %3 {offsets = [0, 0], sizes = [144, 1], strides = [1, 1]} : vector<144x5xf32> to vector<144x1xf32>
    %6 = vector.extract_strided_slice %4 {offsets = [0, 0], sizes = [1, 64], strides = [1, 1]} : vector<5x64xf32> to vector<1x64xf32>
    %7 = vector.broadcast %5 : vector<144x1xf32> to vector<144x64xf32>
    %8 = vector.broadcast %6 : vector<1x64xf32> to vector<144x64xf32>
    %9 = arith.mulf %7, %8 : vector<144x64xf32>
    %10 = vector.extract_strided_slice %3 {offsets = [0, 1], sizes = [144, 1], strides = [1, 1]} : vector<144x5xf32> to vector<144x1xf32>
    %11 = vector.extract_strided_slice %4 {offsets = [1, 0], sizes = [1, 64], strides = [1, 1]} : vector<5x64xf32> to vector<1x64xf32>
    %12 = vector.broadcast %10 : vector<144x1xf32> to vector<144x64xf32>
    %13 = vector.broadcast %11 : vector<1x64xf32> to vector<144x64xf32>
    %14 = arith.mulf %12, %13 : vector<144x64xf32>
    %15 = arith.addf %9, %14 : vector<144x64xf32>
    %16 = vector.extract_strided_slice %3 {offsets = [0, 2], sizes = [144, 1], strides = [1, 1]} : vector<144x5xf32> to vector<144x1xf32>
    %17 = vector.extract_strided_slice %4 {offsets = [2, 0], sizes = [1, 64], strides = [1, 1]} : vector<5x64xf32> to vector<1x64xf32>
    %18 = vector.broadcast %16 : vector<144x1xf32> to vector<144x64xf32>
    %19 = vector.broadcast %17 : vector<1x64xf32> to vector<144x64xf32>
    %20 = arith.mulf %18, %19 : vector<144x64xf32>
    %21 = arith.addf %15, %20 : vector<144x64xf32>
    %22 = vector.extract_strided_slice %3 {offsets = [0, 3], sizes = [144, 1], strides = [1, 1]} : vector<144x5xf32> to vector<144x1xf32>
    %23 = vector.extract_strided_slice %4 {offsets = [3, 0], sizes = [1, 64], strides = [1, 1]} : vector<5x64xf32> to vector<1x64xf32>
    %24 = vector.broadcast %22 : vector<144x1xf32> to vector<144x64xf32>
    %25 = vector.broadcast %23 : vector<1x64xf32> to vector<144x64xf32>
    %26 = arith.mulf %24, %25 : vector<144x64xf32>
    %27 = arith.addf %21, %26 : vector<144x64xf32>
    %28 = vector.extract_strided_slice %3 {offsets = [0, 4], sizes = [144, 1], strides = [1, 1]} : vector<144x5xf32> to vector<144x1xf32>
    %29 = vector.extract_strided_slice %4 {offsets = [4, 0], sizes = [1, 64], strides = [1, 1]} : vector<5x64xf32> to vector<1x64xf32>
    %30 = vector.broadcast %28 : vector<144x1xf32> to vector<144x64xf32>
    %31 = vector.broadcast %29 : vector<1x64xf32> to vector<144x64xf32>
    %32 = arith.mulf %30, %31 : vector<144x64xf32>
    %33 = arith.addf %27, %32 : vector<144x64xf32>
    %c0_5 = arith.constant 0 : index
    %c0_6 = arith.constant 0 : index
    %34 = vector.load %arg3[%c0_5, %c0_6] : memref<1x64xf32, #tpu.memory_space<vmem>>, vector<1x64xf32>
    %35 = vector.broadcast %34 : vector<1x64xf32> to vector<144x64xf32>
    %36 = arith.addf %33, %35 : vector<144x64xf32>
    %cst = arith.constant 0.000000e+00 : f32
    %37 = vector.broadcast %cst : f32 to vector<144x64xf32>
    %38 = arith.cmpf oge, %36, %37 : vector<144x64xf32>
    %cst_7 = arith.constant 0.00999999977 : f32
    %39 = vector.broadcast %cst_7 : f32 to vector<144x64xf32>
    %40 = arith.mulf %39, %36 : vector<144x64xf32>
    %41 = arith.select %38, %36, %40 : vector<144x64xi1>, vector<144x64xf32>
    %42 = arith.mulf %41, %2 : vector<144x64xf32>
    %c0_i32 = arith.constant 0 : i32
    %c5_i32 = arith.constant 5 : i32
    %43 = arith.addi %c0_i32, %c5_i32 : i32
    %c1_i32 = arith.constant 1 : i32
    %44 = scf.for %arg9 = %c0_i32 to %43 step %c1_i32 iter_args(%arg10 = %42) -> (vector<144x64xf32>)  : i32 {
      %78 = arith.index_cast %arg9 : i32 to index
      %c0_26 = arith.constant 0 : index
      %c0_27 = arith.constant 0 : index
      %79 = vector.load %arg2[%78, %c0_26, %c0_27] : memref<5x320x64xbf16, #tpu.memory_space<vmem>>, vector<1x320x64xbf16>
      %80 = vector.shape_cast %79 : vector<1x320x64xbf16> to vector<320x64xbf16>
      %c2_i32 = arith.constant 2 : i32
      %81 = tpu.dynamic_rotate %arg10 by %c2_i32 dim 0 : vector<144x64xf32>, i32 -> vector<144x64xf32>
      %82 = arith.truncf %81 : vector<144x64xf32> to vector<144x64xbf16>
      %83 = vector.extract_strided_slice %80 {offsets = [0, 0], sizes = [64, 64], strides = [1, 1]} : vector<320x64xbf16> to vector<64x64xbf16>
      %cst_28 = arith.constant dense<0.000000e+00> : vector<144x64xf32>
      %84 = tpu.matmul %82, %83, %cst_28 {dimension_numbers = #tpu.dot_dimension_numbers<[1], [0], [0], [1], [0, 0, 1, 1], [], []>} : vector<144x64xbf16>, vector<64x64xbf16>, vector<144x64xf32> -> vector<144x64xf32>
      %c1_i32_29 = arith.constant 1 : i32
      %85 = tpu.dynamic_rotate %arg10 by %c1_i32_29 dim 0 : vector<144x64xf32>, i32 -> vector<144x64xf32>
      %86 = arith.truncf %85 : vector<144x64xf32> to vector<144x64xbf16>
      %87 = vector.extract_strided_slice %80 {offsets = [64, 0], sizes = [64, 64], strides = [1, 1]} : vector<320x64xbf16> to vector<64x64xbf16>
      %cst_30 = arith.constant dense<0.000000e+00> : vector<144x64xf32>
      %88 = tpu.matmul %86, %87, %cst_30 {dimension_numbers = #tpu.dot_dimension_numbers<[1], [0], [0], [1], [0, 0, 1, 1], [], []>} : vector<144x64xbf16>, vector<64x64xbf16>, vector<144x64xf32> -> vector<144x64xf32>
      %89 = arith.addf %84, %88 : vector<144x64xf32>
      %90 = arith.truncf %arg10 : vector<144x64xf32> to vector<144x64xbf16>
      %91 = vector.extract_strided_slice %80 {offsets = [128, 0], sizes = [64, 64], strides = [1, 1]} : vector<320x64xbf16> to vector<64x64xbf16>
      %cst_31 = arith.constant dense<0.000000e+00> : vector<144x64xf32>
      %92 = tpu.matmul %90, %91, %cst_31 {dimension_numbers = #tpu.dot_dimension_numbers<[1], [0], [0], [1], [0, 0, 1, 1], [], []>} : vector<144x64xbf16>, vector<64x64xbf16>, vector<144x64xf32> -> vector<144x64xf32>
      %93 = arith.addf %89, %92 : vector<144x64xf32>
      %c143_i32 = arith.constant 143 : i32
      %94 = tpu.dynamic_rotate %arg10 by %c143_i32 dim 0 : vector<144x64xf32>, i32 -> vector<144x64xf32>
      %95 = arith.truncf %94 : vector<144x64xf32> to vector<144x64xbf16>
      %96 = vector.extract_strided_slice %80 {offsets = [192, 0], sizes = [64, 64], strides = [1, 1]} : vector<320x64xbf16> to vector<64x64xbf16>
      %cst_32 = arith.constant dense<0.000000e+00> : vector<144x64xf32>
      %97 = tpu.matmul %95, %96, %cst_32 {dimension_numbers = #tpu.dot_dimension_numbers<[1], [0], [0], [1], [0, 0, 1, 1], [], []>} : vector<144x64xbf16>, vector<64x64xbf16>, vector<144x64xf32> -> vector<144x64xf32>
      %98 = arith.addf %93, %97 : vector<144x64xf32>
      %c142_i32 = arith.constant 142 : i32
      %99 = tpu.dynamic_rotate %arg10 by %c142_i32 dim 0 : vector<144x64xf32>, i32 -> vector<144x64xf32>
      %100 = arith.truncf %99 : vector<144x64xf32> to vector<144x64xbf16>
      %101 = vector.extract_strided_slice %80 {offsets = [256, 0], sizes = [64, 64], strides = [1, 1]} : vector<320x64xbf16> to vector<64x64xbf16>
      %cst_33 = arith.constant dense<0.000000e+00> : vector<144x64xf32>
      %102 = tpu.matmul %100, %101, %cst_33 {dimension_numbers = #tpu.dot_dimension_numbers<[1], [0], [0], [1], [0, 0, 1, 1], [], []>} : vector<144x64xbf16>, vector<64x64xbf16>, vector<144x64xf32> -> vector<144x64xf32>
      %103 = arith.addf %98, %102 : vector<144x64xf32>
      %104 = arith.index_cast %arg9 : i32 to index
      %c0_34 = arith.constant 0 : index
      %c0_35 = arith.constant 0 : index
      %105 = vector.load %arg4[%104, %c0_34, %c0_35] : memref<5x1x64xf32, #tpu.memory_space<vmem>>, vector<1x1x64xf32>
      %106 = vector.shape_cast %105 : vector<1x1x64xf32> to vector<1x64xf32>
      %107 = vector.broadcast %106 : vector<1x64xf32> to vector<144x64xf32>
      %108 = arith.addf %103, %107 : vector<144x64xf32>
      %cst_36 = arith.constant 0.000000e+00 : f32
      %109 = vector.broadcast %cst_36 : f32 to vector<144x64xf32>
      %110 = arith.cmpf oge, %108, %109 : vector<144x64xf32>
      %cst_37 = arith.constant 0.00999999977 : f32
      %111 = vector.broadcast %cst_37 : f32 to vector<144x64xf32>
      %112 = arith.mulf %111, %108 : vector<144x64xf32>
      %113 = arith.select %110, %108, %112 : vector<144x64xi1>, vector<144x64xf32>
      %114 = arith.mulf %113, %2 : vector<144x64xf32>
      %115 = arith.addf %114, %arg10 : vector<144x64xf32>
      scf.yield %115 : vector<144x64xf32>
    }
    %c5_i32_8 = arith.constant 5 : i32
    %c0_9 = arith.constant 0 : index
    %c0_10 = arith.constant 0 : index
    %c0_11 = arith.constant 0 : index
    %45 = vector.load %arg6[%c0_9, %c0_10, %c0_11] : memref<2x72x64xf32, #tpu.memory_space<vmem>>, vector<1x72x64xf32>
    %46 = vector.shape_cast %45 : vector<1x72x64xf32> to vector<72x64xf32>
    %c1 = arith.constant 1 : index
    %c0_12 = arith.constant 0 : index
    %c0_13 = arith.constant 0 : index
    %47 = vector.load %arg6[%c1, %c0_12, %c0_13] : memref<2x72x64xf32, #tpu.memory_space<vmem>>, vector<1x72x64xf32>
    %48 = vector.shape_cast %47 : vector<1x72x64xf32> to vector<72x64xf32>
    %49 = vector.extract_strided_slice %44 {offsets = [0, 0], sizes = [72, 64], strides = [1, 1]} : vector<144x64xf32> to vector<72x64xf32>
    %50 = arith.mulf %49, %46 : vector<72x64xf32>
    %cst_14 = arith.constant dense<0.000000e+00> : vector<72xf32>
    %51 = vector.multi_reduction <add>, %50, %cst_14 [1] : vector<72x64xf32> to vector<72xf32>
    %52 = vector.shape_cast %51 : vector<72xf32> to vector<72x1xf32>
    %cst_15 = arith.constant dense<0.000000e+00> : vector<1xf32>
    %53 = vector.multi_reduction <add>, %52, %cst_15 [0] : vector<72x1xf32> to vector<1xf32>
    %54 = vector.shape_cast %53 : vector<1xf32> to vector<1x1xf32>
    %55 = arith.mulf %49, %48 : vector<72x64xf32>
    %cst_16 = arith.constant dense<0.000000e+00> : vector<72xf32>
    %56 = vector.multi_reduction <add>, %55, %cst_16 [1] : vector<72x64xf32> to vector<72xf32>
    %57 = vector.shape_cast %56 : vector<72xf32> to vector<72x1xf32>
    %cst_17 = arith.constant dense<0.000000e+00> : vector<1xf32>
    %58 = vector.multi_reduction <add>, %57, %cst_17 [0] : vector<72x1xf32> to vector<1xf32>
    %59 = vector.shape_cast %58 : vector<1xf32> to vector<1x1xf32>
    %60 = tpu.concatenate %54, %59 in 1 : vector<1x1xf32>, vector<1x1xf32> -> vector<1x2xf32>
    %61 = vector.extract_strided_slice %44 {offsets = [72, 0], sizes = [72, 64], strides = [1, 1]} : vector<144x64xf32> to vector<72x64xf32>
    %62 = arith.mulf %61, %46 : vector<72x64xf32>
    %cst_18 = arith.constant dense<0.000000e+00> : vector<72xf32>
    %63 = vector.multi_reduction <add>, %62, %cst_18 [1] : vector<72x64xf32> to vector<72xf32>
    %64 = vector.shape_cast %63 : vector<72xf32> to vector<72x1xf32>
    %cst_19 = arith.constant dense<0.000000e+00> : vector<1xf32>
    %65 = vector.multi_reduction <add>, %64, %cst_19 [0] : vector<72x1xf32> to vector<1xf32>
    %66 = vector.shape_cast %65 : vector<1xf32> to vector<1x1xf32>
    %67 = arith.mulf %61, %48 : vector<72x64xf32>
    %cst_20 = arith.constant dense<0.000000e+00> : vector<72xf32>
    %68 = vector.multi_reduction <add>, %67, %cst_20 [1] : vector<72x64xf32> to vector<72xf32>
    %69 = vector.shape_cast %68 : vector<72xf32> to vector<72x1xf32>
    %cst_21 = arith.constant dense<0.000000e+00> : vector<1xf32>
    %70 = vector.multi_reduction <add>, %69, %cst_21 [0] : vector<72x1xf32> to vector<1xf32>
    %71 = vector.shape_cast %70 : vector<1xf32> to vector<1x1xf32>
    %72 = tpu.concatenate %66, %71 in 1 : vector<1x1xf32>, vector<1x1xf32> -> vector<1x2xf32>
    %73 = tpu.concatenate %60, %72 in 0 : vector<1x2xf32>, vector<1x2xf32> -> vector<2x2xf32>
    %c0_22 = arith.constant 0 : index
    %c0_23 = arith.constant 0 : index
    %74 = vector.load %arg7[%c0_22, %c0_23] : memref<1x2xf32, #tpu.memory_space<vmem>>, vector<1x2xf32>
    %75 = vector.broadcast %74 : vector<1x2xf32> to vector<2x2xf32>
    %76 = arith.addf %73, %75 : vector<2x2xf32>
    %c0_24 = arith.constant 0 : index
    %c0_25 = arith.constant 0 : index
    %77 = vector.load %arg8[%c0_24, %c0_25] : memref<2x2xf32, #tpu.memory_space<vmem>>, vector<2x2xf32>
    tpu.vector_store %arg8[%c0_24, %c0_25], %76 {strides = array<i32>} : memref<2x2xf32, #tpu.memory_space<vmem>>, vector<2x2xf32>,
    return
  }
}

</mosaic_0001>

<bundles_post_ra>
// kernel: tpu_custom_call.1
= control target key start
LH: loop header
LB: loop body
LE: loop exit
PB: predicated region body
PF: predicated region fallthrough
CT: control target
= control target key end

     0   :  { %v2587_v3 = vmov 0   ;;  %s4026_s0 = inlined_call_operand.vmem [shape: f32[144,5], index: 0, kind: input, shape index: {}]   ;;  %s4027_s1 = inlined_call_operand.vmem [shape: f32[5,64], index: 1, kind: input, shape index: {}]   ;;  %s4028_s2 = inlined_call_operand.vmem [shape: bf16[5,320,64], index: 2, kind: input, shape index: {}]   ;;  %s4029_s3 = inlined_call_operand.vmem [shape: f32[1,64], index: 3, kind: input, shape index: {}]   ;;  %s4030_s4 = inlined_call_operand.vmem [shape: f32[5,1,64], index: 4, kind: input, shape index: {}]   ;;  %s4031_s5 = inlined_call_operand.vmem [shape: f32[144,1], index: 5, kind: input, shape index: {}]   ;;  %s4032_s6 = inlined_call_operand.vmem [shape: f32[2,72,64], index: 6, kind: input, shape index: {}]   ;;  %s4033_s7 = inlined_call_operand.vmem [shape: f32[1,2], index: 7, kind: input, shape index: {}]   ;;  %s4034_s8 = inlined_call_operand.hbm [shape: f32[2,2], index: 8, kind: output, shape index: {}]  }
   0x1   :  { %v35_v0 = vld [vmem:[%s4031_s5 + $0x20] sm:$0xff]  ;;  %v33_v1 = vld [vmem:[%s4031_s5 + $0x10] sm:$0xff]  ;;  %2393 = vset.pattern.permute.xlu2 %v2587_v3  ;;  %2392 = vset.pattern.permute.xlu1 %v2587_v3 }
   0x2   :  { %v31_v2 = vld [vmem:[%s4031_s5] sm:$0xff]  ;;  %2391 = vset.pattern.permute.xlu0 %v2587_v3  ;;  %71 = vperm.xlu2 %2393, %v35_v0  }
   0x3   :  { %61 = vperm.xlu1 %2392, %v33_v1   ;;  %51 = vperm.xlu0 %2391, %v31_v2  }
   0x4   :  { %13 = vsyncpa [#allocation3], 0  ;;  %v36_v4 = vld [vmem:[%s4031_s5 + $0x28] sm:$0xff]  ;;  %v34_v5 = vld [vmem:[%s4031_s5 + $0x18] sm:$0xff]  ;;  %v2588_v38 = vmov 1   ;;  %v2589_v53 = vmov 2  }
   0x5   :  { %v32_v6 = vld [vmem:[%s4031_s5 + $0x8] sm:$0xff]  ;;  %v39_v7 = vld [vmem:[%s4031_s5 + $0x40] sm:$0xff]  ;;  %v38_v8 = vld [vmem:[%s4031_s5 + $0x38] sm:$0xff] }
   0x6   :  { %v37_v9 = vld [vmem:[%s4031_s5 + $0x30] sm:$0xff]  ;;  %v42_v10 = vld [vmem:[%s4031_s5 + $0x58] sm:$0xff]  ;;  %v40_v12 = vld [vmem:[%s4031_s5 + $0x48] sm:$0xff] }
   0x7   :  { %v41_v11 = vld [vmem:[%s4031_s5 + $0x50] sm:$0xff]  ;;  %v44_v14 = vld [vmem:[%s4031_s5 + $0x68] sm:$0xff]  ;;  %v43_v15 = vld [vmem:[%s4031_s5 + $0x60] sm:$0xff] }
   0x8   :  { %v45_v13 = vld [vmem:[%s4031_s5 + $0x70] sm:$0xff]  ;;  %v48_v16 = vld [vmem:[%s4031_s5 + $0x88] sm:$0xff]  ;;  %v47_v17 = vld [vmem:[%s4031_s5 + $0x80] sm:$0xff] }
   0x9   :  { %v46_v18 = vld [vmem:[%s4031_s5 + $0x78] sm:$0xff]  ;;  %v2695_v19 = vld [vmem:[%s4026_s0 + $0x10] sm:$0xff]  ;;  %v2700_v20 = vld [vmem:[%s4026_s0 + $0x8] sm:$0xff] }
   0xa   :  { %76 = vperm.xlu2 %2393, %v36_v4   ;;  %v2705_v21 = vld [vmem:[%s4026_s0] sm:$0xff]  ;;  %v2713_v22 = vld [vmem:[%s4026_s0 + $0x28] sm:$0xff]  ;;  %v2723_v24 = vld [vmem:[%s4026_s0 + $0x18] sm:$0xff] }
   0xb   :  { %66 = vperm.xlu1 %2392, %v34_v5   ;;  %56 = vperm.xlu0 %2391, %v32_v6   ;;  %v2718_v23 = vld [vmem:[%s4026_s0 + $0x20] sm:$0xff]  ;;  %v2736_v26 = vld [vmem:[%s4026_s0 + $0x38] sm:$0xff]  ;;  %v2741_v27 = vld [vmem:[%s4026_s0 + $0x30] sm:$0xff] }
   0xc   :  { %v2731_v25 = vld [vmem:[%s4026_s0 + $0x40] sm:$0xff]  ;;  %v2749_v28 = vld [vmem:[%s4026_s0 + $0x58] sm:$0xff]  ;;  %v2754_v29 = vld [vmem:[%s4026_s0 + $0x50] sm:$0xff] }
   0xd   :  { %v2759_v30 = vld [vmem:[%s4026_s0 + $0x48] sm:$0xff]  ;;  %v2767_v31 = vld [vmem:[%s4026_s0 + $0x70] sm:$0xff]  ;;  %v2777_v33 = vld [vmem:[%s4026_s0 + $0x60] sm:$0xff] }
   0xe   :  { %v2772_v32 = vld [vmem:[%s4026_s0 + $0x68] sm:$0xff]  ;;  %v2790_v35 = vld [vmem:[%s4026_s0 + $0x80] sm:$0xff]  ;;  %v2795_v36 = vld [vmem:[%s4026_s0 + $0x78] sm:$0xff] }
   0xf   :  { %v2785_v34 = vld [vmem:[%s4026_s0 + $0x88] sm:$0xff]  ;;  %v2884_v5 = vld [vmem:[%s4027_s1] sm:$0x1f] }
  0x10   :  { %v2887_v6 = vperm.slane %v2884_v5, 0 }
  0x12   :  { %91 = vperm.xlu2 %2393, %v39_v7   ;;  %v2890_v7 = vperm.slane %v2884_v5, 1 }
  0x13   :  { %86 = vperm.xlu1 %2392, %v38_v8   ;;  %81 = vperm.xlu0 %2391, %v37_v9  }
  0x1a   :  { %106 = vperm.xlu2 %2393, %v42_v10   ;;  %v2590_v10 = vmov 3  }
  0x1b   :  { %101 = vperm.xlu1 %2392, %v41_v11   ;;  %96 = vperm.xlu0 %2391, %v40_v12  }
  0x22   :  { %121 = vperm.xlu2 %2393, %v45_v13  }
  0x23   :  { %116 = vperm.xlu1 %2392, %v44_v14   ;;  %111 = vperm.xlu0 %2391, %v43_v15  }
  0x2a   :  { %136 = vperm.xlu2 %2393, %v48_v16  }
  0x2b   :  { %131 = vperm.xlu1 %2392, %v47_v17   ;;  %126 = vperm.xlu0 %2391, %v46_v18  }
  0x32   :  { %170 = vperm.xlu2 %2393, %v2695_v19  }
  0x33   :  { %165 = vperm.xlu1 %2392, %v2700_v20   ;;  %160 = vperm.xlu0 %2391, %v2705_v21  }
  0x3a   :  { %185 = vperm.xlu2 %2393, %v2713_v22  }
  0x3b   :  { %180 = vperm.xlu1 %2392, %v2718_v23   ;;  %175 = vperm.xlu0 %2391, %v2723_v24  }
  0x42   :  { %200 = vperm.xlu2 %2393, %v2731_v25  }
  0x43   :  { %195 = vperm.xlu1 %2392, %v2736_v26   ;;  %190 = vperm.xlu0 %2391, %v2741_v27  }
  0x4a   :  { %215 = vperm.xlu2 %2393, %v2749_v28  }
  0x4b   :  { %210 = vperm.xlu1 %2392, %v2754_v29   ;;  %205 = vperm.xlu0 %2391, %v2759_v30  }
  0x52   :  { %230 = vperm.xlu2 %2393, %v2767_v31  }
  0x53   :  { %225 = vperm.xlu1 %2392, %v2772_v32   ;;  %220 = vperm.xlu0 %2391, %v2777_v33  }
  0x5a   :  { %245 = vperm.xlu2 %2393, %v2785_v34  }
  0x5b   :  { %240 = vperm.xlu1 %2392, %v2790_v35   ;;  %235 = vperm.xlu0 %2391, %v2795_v36  }
  0x5c   :  { %v2800_v37 = vpop.permute.xlu2 %71 }
  0x62   :  { %2396 = vset.pattern.permute.xlu2 %v2588_v38 }
  0x63   :  { %2395 = vset.pattern.permute.xlu1 %v2588_v38  ;;  %2394 = vset.pattern.permute.xlu0 %v2588_v38 }
  0x64   :  { %276 = vperm.xlu2 %2396, %v2695_v19   ;;  %272 = vperm.xlu1 %2395, %v2700_v20   ;;  %v2804_v39 = vpop.permute.xlu2 %76 }
  0x65   :  { %268 = vperm.xlu0 %2394, %v2705_v21  }
  0x6c   :  { %284 = vperm.xlu2 %2396, %v2718_v23   ;;  %280 = vperm.xlu1 %2395, %v2723_v24   ;;  %v2809_v40 = vpop.permute.xlu2 %91 }
  0x6d   :  { %288 = vperm.xlu0 %2394, %v2713_v22  }
  0x74   :  { %296 = vperm.xlu2 %2396, %v2736_v26   ;;  %292 = vperm.xlu1 %2395, %v2741_v27   ;;  %v2814_v41 = vpop.permute.xlu2 %106 }
  0x75   :  { %300 = vperm.xlu0 %2394, %v2731_v25   ;;  %v2817_v42 = vpop.permute.xlu1 %61  ;;  %v2819_v43 = vpop.permute.xlu0 %51 }
  0x7c   :  { %308 = vperm.xlu2 %2396, %v2754_v29   ;;  %304 = vperm.xlu1 %2395, %v2759_v30   ;;  %v2823_v44 = vpop.permute.xlu2 %121 }
  0x7d   :  { %4040 = vst [vmem:[#allocation5_spill] sm:$0xff] %v2823_v44  ;;  %312 = vperm.xlu0 %2394, %v2749_v28   ;;  %v2826_v45 = vpop.permute.xlu1 %66  ;;  %v2828_v46 = vpop.permute.xlu0 %56 }
  0x84   :  { %320 = vperm.xlu2 %2396, %v2772_v32   ;;  %316 = vperm.xlu1 %2395, %v2777_v33   ;;  %v2832_v47 = vpop.permute.xlu2 %136 }
  0x85   :  { %4041 = vst [vmem:[#allocation6_spill] sm:$0xff] %v2832_v47  ;;  %324 = vperm.xlu0 %2394, %v2767_v31   ;;  %v2835_v48 = vpop.permute.xlu1 %86  ;;  %v2837_v49 = vpop.permute.xlu0 %81 }
  0x86   :  { %4042 = vst [vmem:[#allocation7_spill] sm:$0xff] %v2837_v49 }
  0x8c   :  { %332 = vperm.xlu2 %2396, %v2790_v35   ;;  %328 = vperm.xlu1 %2395, %v2795_v36   ;;  %v171_v50 = vpop.permute.xlu2 %170 }
  0x8d   :  { %336 = vperm.xlu0 %2394, %v2785_v34   ;;  %v2842_v51 = vpop.permute.xlu1 %101  ;;  %v2844_v52 = vpop.permute.xlu0 %96  ;;  %v251_v12 = vmul.f32 %v2887_v6, %v171_v50 }
  0x8e   :  { %4043 = vst [vmem:[#allocation8_spill] sm:$0xff] %v2844_v52 }
  0x94   :  { %2398 = vset.pattern.permute.xlu2 %v2589_v53  ;;  %2397 = vset.pattern.permute.xlu1 %v2589_v53  ;;  %v2846_v54 = vpop.permute.xlu2 %185 }
  0x95   :  { %2399 = vset.pattern.permute.xlu0 %v2589_v53  ;;  %381 = vperm.xlu2 %2398, %v2700_v20   ;;  %v2849_v55 = vpop.permute.xlu1 %116  ;;  %v2851_v56 = vpop.permute.xlu0 %111 }
  0x96   :  { %4044 = vst [vmem:[#allocation9_spill] sm:$0xff] %v2851_v56  ;;  %377 = vperm.xlu1 %2397, %v2705_v21   ;;  %385 = vperm.xlu0 %2399, %v2695_v19  }
  0x9c   :  { %v2855_v57 = vpop.permute.xlu2 %200 }
  0x9d   :  { %393 = vperm.xlu2 %2398, %v2718_v23   ;;  %v2858_v58 = vpop.permute.xlu1 %131  ;;  %v2860_v59 = vpop.permute.xlu0 %126 }
  0x9e   :  { %4045 = vst [vmem:[#allocation10_spill] sm:$0xff] %v2858_v58  ;;  %389 = vperm.xlu1 %2397, %v2723_v24   ;;  %405 = vperm.xlu0 %2399, %v2736_v26  }
  0x9f   :  { %4046 = vst [vmem:[#allocation11_spill] sm:$0xff] %v2860_v59 }
  0xa4   :  { %v2864_v60 = vpop.permute.xlu2 %215 }
  0xa5   :  { %401 = vperm.xlu2 %2398, %v2741_v27   ;;  %v166_v61 = vpop.permute.xlu1 %165  ;;  %v161_v62 = vpop.permute.xlu0 %160 }
  0xa6   :  { %397 = vperm.xlu1 %2397, %v2713_v22   ;;  %417 = vperm.xlu0 %2399, %v2754_v29  }
  0xac   :  { %v2869_v63 = vpop.permute.xlu2 %230 }
  0xad   :  { %413 = vperm.xlu2 %2398, %v2759_v30   ;;  %v181_v0 = vpop.permute.xlu1 %180  ;;  %v176_v1 = vpop.permute.xlu0 %175 }
  0xae   :  { %409 = vperm.xlu1 %2397, %v2731_v25   ;;  %429 = vperm.xlu0 %2399, %v2772_v32   ;;  %v253_v18 = vmul.f32 %v2887_v6, %v181_v0 }
  0xb4   :  { %v2874_v2 = vpop.permute.xlu2 %245 }
  0xb5   :  { %425 = vperm.xlu2 %2398, %v2777_v33   ;;  %v196_v3 = vpop.permute.xlu1 %195  ;;  %v2877_v4 = vpop.permute.xlu0 %190 }
  0xb6   :  { %421 = vperm.xlu1 %2397, %v2749_v28   ;;  %441 = vperm.xlu0 %2399, %v2790_v35  }
  0xbd   :  { %437 = vperm.xlu2 %2398, %v2795_v36   ;;  %v211_v8 = vpop.permute.xlu1 %210  ;;  %v2893_v9 = vpop.permute.xlu0 %205 }
  0xbe   :  { %433 = vperm.xlu1 %2397, %v2767_v31   ;;  %2401 = vset.pattern.permute.xlu0 %v2590_v10  ;;  %v277_v11 = vpop.permute.xlu2 %276 }
  0xbf   :  { %v342_v13 = vmul.f32 %v2890_v7, %v277_v11  ;;  %490 = vperm.xlu0 %2401, %v2700_v20  }
  0xc1   :  { %v2899_v14 = vadd.f32 %v342_v13, %v251_v12  ;;  %v256_v13 = vmul.f32 %v2887_v6, %v196_v3 }
  0xc5   :  { %2400 = vset.pattern.permute.xlu2 %v2590_v10  ;;  %v226_v15 = vpop.permute.xlu1 %225  ;;  %v2901_v16 = vpop.permute.xlu0 %220 }
  0xc6   :  { %445 = vperm.xlu1 %2397, %v2785_v34   ;;  %486 = vperm.xlu2 %2400, %v2705_v21   ;;  %v285_v17 = vpop.permute.xlu2 %284 }
  0xc7   :  { %v344_v38 = vmul.f32 %v2890_v7, %v285_v17  ;;  %510 = vperm.xlu0 %2401, %v2741_v27   ;;  %v250_v17 = vmul.f32 %v2887_v6, %v166_v61 }
  0xc9   :  { %v2908_v50 = vadd.f32 %v344_v38, %v253_v18 }
  0xcd   :  { %v241_v53 = vpop.permute.xlu1 %240  ;;  %v2910_v11 = vpop.permute.xlu0 %235 }
  0xce   :  { %2402 = vset.pattern.permute.xlu1 %v2590_v10  ;;  %498 = vperm.xlu2 %2400, %v2723_v24   ;;  %v297_v12 = vpop.permute.xlu2 %296  ;;  %v259_v10 = vmul.f32 %v2887_v6, %v211_v8  ;;  %v252_v8 = vmul.f32 %v2887_v6, %v176_v1 }
  0xcf   :  { %v347_v59 = vmul.f32 %v2890_v7, %v297_v12  ;;  %494 = vperm.xlu1 %2402, %v2695_v19   ;;  %522 = vperm.xlu0 %2401, %v2759_v30  }
  0xd1   :  { %v2917_v0 = vadd.f32 %v347_v59, %v256_v13  ;;  %v249_v59 = vmul.f32 %v2887_v6, %v161_v62 }
  0xd6   :  { %506 = vperm.xlu2 %2400, %v2713_v22   ;;  %v309_v18 = vpop.permute.xlu2 %308  ;;  %v273_v38 = vpop.permute.xlu1 %272 }
  0xd7   :  { %v350_v56 = vmul.f32 %v2890_v7, %v309_v18  ;;  %502 = vperm.xlu1 %2402, %v2718_v23   ;;  %v341_v3 = vmul.f32 %v2890_v7, %v273_v38  ;;  %534 = vperm.xlu0 %2401, %v2777_v33   ;;  %v269_v12 = vpop.permute.xlu0 %268  ;;  %v262_v38 = vmul.f32 %v2887_v6, %v226_v15 }
  0xd8   :  { %v340_v13 = vmul.f32 %v2890_v7, %v269_v12  ;;  %v255_v15 = vmul.f32 %v2887_v6, %v2877_v4 }
  0xd9   :  { %v2928_v61 = vadd.f32 %v350_v56, %v259_v10  ;;  %v359_v52 = vadd.f32 %v341_v3, %v250_v17  ;;  %v254_v17 = vmul.f32 %v2887_v6, %v2846_v54 }
  0xda   :  { %v2930_v47 = vadd.f32 %v340_v13, %v249_v59  ;;  %v265_v13 = vmul.f32 %v2887_v6, %v241_v53 }
  0xde   :  { %518 = vperm.xlu2 %2400, %v2731_v25   ;;  %v321_v18 = vpop.permute.xlu2 %320  ;;  %v281_v49 = vpop.permute.xlu1 %280 }
  0xdf   :  { %v353_v58 = vmul.f32 %v2890_v7, %v321_v18  ;;  %514 = vperm.xlu1 %2402, %v2736_v26   ;;  %v343_v62 = vmul.f32 %v2890_v7, %v281_v49  ;;  %546 = vperm.xlu0 %2401, %v2795_v36   ;;  %v289_v56 = vpop.permute.xlu0 %288 }
  0xe0   :  { %v345_v1 = vmul.f32 %v2890_v7, %v289_v56 }
  0xe1   :  { %v2942_v10 = vadd.f32 %v353_v58, %v262_v38  ;;  %v2944_v3 = vadd.f32 %v343_v62, %v252_v8  ;;  %v2591_v58 = vmov 4   ;;  %v257_v38 = vmul.f32 %v2887_v6, %v2855_v57 }
  0xe2   :  { %v2946_v12 = vadd.f32 %v345_v1, %v254_v17  ;;  %v2964_v17 = vperm.slane %v2884_v5, 2 }
  0xe6   :  { %530 = vperm.xlu2 %2400, %v2749_v28   ;;  %v333_v49 = vpop.permute.xlu2 %332  ;;  %v293_v59 = vpop.permute.xlu1 %292 }
  0xe7   :  { %v356_v18 = vmul.f32 %v2890_v7, %v333_v49  ;;  %526 = vperm.xlu1 %2402, %v2754_v29   ;;  %v346_v54 = vmul.f32 %v2890_v7, %v293_v59  ;;  %2403 = vset.pattern.permute.xlu0 %v2591_v58  ;;  %v301_v8 = vpop.permute.xlu0 %300  ;;  %v258_v49 = vmul.f32 %v2887_v6, %v2893_v9 }
  0xe8   :  { %v348_v4 = vmul.f32 %v2890_v7, %v301_v8  ;;  %595 = vperm.xlu0 %2403, %v2705_v21  }
  0xe9   :  { %v2959_v62 = vadd.f32 %v356_v18, %v265_v13  ;;  %v364_v56 = vadd.f32 %v346_v54, %v255_v15  ;;  %v260_v15 = vmul.f32 %v2887_v6, %v2864_v60 }
  0xea   :  { %v2961_v53 = vadd.f32 %v348_v4, %v257_v38  ;;  %v261_v4 = vmul.f32 %v2887_v6, %v2901_v16 }
  0xee   :  { %542 = vperm.xlu2 %2400, %v2767_v31   ;;  %v305_v1 = vpop.permute.xlu1 %304 }
  0xef   :  { %538 = vperm.xlu1 %2402, %v2772_v32   ;;  %v349_v57 = vmul.f32 %v2890_v7, %v305_v1  ;;  %v313_v59 = vpop.permute.xlu0 %312  ;;  %v382_v21 = vpop.permute.xlu2 %381 }
  0xf0   :  { %v351_v13 = vmul.f32 %v2890_v7, %v313_v59  ;;  %v450_v18 = vmul.f32 %v2964_v17, %v382_v21  ;;  %615 = vperm.xlu0 %2403, %v2713_v22   ;;  %v263_v22 = vmul.f32 %v2887_v6, %v2869_v63 }
  0xf1   :  { %v367_v54 = vadd.f32 %v349_v57, %v258_v49 }
  0xf2   :  { %v2976_v8 = vadd.f32 %v351_v13, %v260_v15  ;;  %v2978_v38 = vadd.f32 %v450_v18, %v359_v52  ;;  %v264_v13 = vmul.f32 %v2887_v6, %v2910_v11 }
  0xf6   :  { %554 = vperm.xlu2 %2400, %v2785_v34   ;;  %v317_v9 = vpop.permute.xlu1 %316 }
  0xf7   :  { %550 = vperm.xlu1 %2402, %v2790_v35   ;;  %v352_v60 = vmul.f32 %v2890_v7, %v317_v9  ;;  %v325_v1 = vpop.permute.xlu0 %324  ;;  %v394_v59 = vpop.permute.xlu2 %393 }
  0xf8   :  { %v354_v49 = vmul.f32 %v2890_v7, %v325_v1  ;;  %v453_v52 = vmul.f32 %v2964_v17, %v394_v59  ;;  %627 = vperm.xlu0 %2403, %v2731_v25   ;;  %v266_v25 = vmul.f32 %v2887_v6, %v2874_v2 }
  0xf9   :  { %v370_v57 = vadd.f32 %v352_v60, %v261_v4 }
  0xfa   :  { %v2990_v21 = vadd.f32 %v354_v49, %v263_v22  ;;  %v2993_v16 = vadd.f32 %v453_v52, %v2908_v50 }
  0xfe   :  { %2405 = vset.pattern.permute.xlu2 %v2591_v58  ;;  %v329_v15 = vpop.permute.xlu1 %328 }
  0xff   :  { %2404 = vset.pattern.permute.xlu1 %v2591_v58  ;;  %v355_v63 = vmul.f32 %v2890_v7, %v329_v15  ;;  %v337_v18 = vpop.permute.xlu0 %336  ;;  %603 = vperm.xlu2 %2405, %v2695_v19   ;;  %v402_v9 = vpop.permute.xlu2 %401 }
 0x100   :  { %v357_v4 = vmul.f32 %v2890_v7, %v337_v18  ;;  %v455_v50 = vmul.f32 %v2964_v17, %v402_v9  ;;  %599 = vperm.xlu1 %2404, %v2700_v20   ;;  %639 = vperm.xlu0 %2403, %v2749_v28  }
 0x101   :  { %v373_v60 = vadd.f32 %v355_v63, %v264_v13 }
 0x102   :  { %v3005_v11 = vadd.f32 %v357_v4, %v266_v25  ;;  %v3007_v58 = vadd.f32 %v455_v50, %v364_v56 }
 0x107   :  { %611 = vperm.xlu2 %2405, %v2718_v23   ;;  %v414_v19 = vpop.permute.xlu2 %413 }
 0x108   :  { %v458_v1 = vmul.f32 %v2964_v17, %v414_v19  ;;  %607 = vperm.xlu1 %2404, %v2723_v24   ;;  %v378_v2 = vpop.permute.xlu1 %377  ;;  %651 = vperm.xlu0 %2403, %v2767_v31   ;;  %v386_v6 = vpop.permute.xlu0 %385 }
 0x109   :  { %v449_v20 = vmul.f32 %v2964_v17, %v378_v2  ;;  %v451_v28 = vmul.f32 %v2964_v17, %v386_v6 }
 0x10a   :  { %v3015_v7 = vadd.f32 %v458_v1, %v367_v54 }
 0x10b   :  { %v467_v56 = vadd.f32 %v449_v20, %v2930_v47  ;;  %v3019_v59 = vadd.f32 %v451_v28, %v2899_v14 }
 0x10f   :  { %623 = vperm.xlu2 %2405, %v2736_v26   ;;  %v426_v23 = vpop.permute.xlu2 %425 }
 0x110   :  { %v461_v24 = vmul.f32 %v2964_v17, %v426_v23  ;;  %619 = vperm.xlu1 %2404, %v2741_v27   ;;  %v390_v31 = vpop.permute.xlu1 %389  ;;  %663 = vperm.xlu0 %2403, %v2785_v34   ;;  %v406_v22 = vpop.permute.xlu0 %405 }
 0x111   :  { %v452_v49 = vmul.f32 %v2964_v17, %v390_v31  ;;  %v456_v54 = vmul.f32 %v2964_v17, %v406_v22 }
 0x112   :  { %v3027_v52 = vadd.f32 %v461_v24, %v370_v57 }
 0x113   :  { %v470_v47 = vadd.f32 %v452_v49, %v2944_v3  ;;  %v3031_v14 = vadd.f32 %v456_v54, %v2917_v0 }
 0x117   :  { %635 = vperm.xlu2 %2405, %v2754_v29   ;;  %v438_v26 = vpop.permute.xlu2 %437  ;;  %v3045_v29 = vperm.slane %v2884_v5, 3 }
 0x118   :  { %v464_v27 = vmul.f32 %v2964_v17, %v438_v26  ;;  %631 = vperm.xlu1 %2404, %v2759_v30   ;;  %v398_v34 = vpop.permute.xlu1 %397  ;;  %v418_v15 = vpop.permute.xlu0 %417 }
 0x119   :  { %v454_v13 = vmul.f32 %v2964_v17, %v398_v34  ;;  %v459_v63 = vmul.f32 %v2964_v17, %v418_v15 }
 0x11a   :  { %v3038_v57 = vadd.f32 %v464_v27, %v373_v60 }
 0x11b   :  { %v472_v3 = vadd.f32 %v454_v13, %v2946_v12  ;;  %v3042_v0 = vadd.f32 %v459_v63, %v2928_v61 }
 0x11f   :  { %647 = vperm.xlu2 %2405, %v2772_v32  }
 0x120   :  { %643 = vperm.xlu1 %2404, %v2777_v33   ;;  %v410_v30 = vpop.permute.xlu1 %409  ;;  %v430_v18 = vpop.permute.xlu0 %429 }
 0x121   :  { %v457_v9 = vmul.f32 %v2964_v17, %v410_v30  ;;  %v462_v25 = vmul.f32 %v2964_v17, %v430_v18  ;;  %v487_v4 = vpop.permute.xlu2 %486 }
 0x122   :  { %v558_v50 = vmul.f32 %v3045_v29, %v487_v4 }
 0x123   :  { %v475_v12 = vadd.f32 %v457_v9, %v2961_v53  ;;  %v3054_v61 = vadd.f32 %v462_v25, %v2942_v10 }
 0x124   :  { %v576_v60 = vadd.f32 %v558_v50, %v467_v56 }
 0x127   :  { %659 = vperm.xlu2 %2405, %v2790_v35  }
 0x128   :  { %655 = vperm.xlu1 %2404, %v2795_v36   ;;  %v422_v32 = vpop.permute.xlu1 %421  ;;  %v442_v33 = vpop.permute.xlu0 %441 }
 0x129   :  { %v460_v19 = vmul.f32 %v2964_v17, %v422_v32  ;;  %v465_v1 = vmul.f32 %v2964_v17, %v442_v33  ;;  %v499_v2 = vpop.permute.xlu2 %498 }
 0x12a   :  { %v561_v6 = vmul.f32 %v3045_v29, %v499_v2 }
 0x12b   :  { %v3062_v20 = vadd.f32 %v460_v19, %v2976_v8  ;;  %v3065_v10 = vadd.f32 %v465_v1, %v2959_v62  ;;  %v3109_v1 = vld [vmem:[%s4029_s3] ss:$0 sm:$0xff]  ;;  %s3257_s3 = smov 0  }
 0x12c   :  { %v3067_v53 = vadd.f32 %v561_v6, %v470_v47 }
 0x130   :  { %v434_v35 = vpop.permute.xlu1 %433 }
 0x131   :  { %v463_v36 = vmul.f32 %v2964_v17, %v434_v35  ;;  %v507_v28 = vpop.permute.xlu2 %506  ;;  %v491_v56 = vpop.permute.xlu0 %490 }
 0x132   :  { %v563_v23 = vmul.f32 %v3045_v29, %v507_v28  ;;  %v559_v24 = vmul.f32 %v3045_v29, %v491_v56 }
 0x133   :  { %v3073_v31 = vadd.f32 %v463_v36, %v2990_v21 }
 0x134   :  { %v581_v22 = vadd.f32 %v563_v23, %v472_v3  ;;  %v3076_v8 = vadd.f32 %v559_v24, %v2978_v38 }
 0x138   :  { %v446_v62 = vpop.permute.xlu1 %445 }
 0x139   :  { %v466_v49 = vmul.f32 %v2964_v17, %v446_v62  ;;  %v519_v54 = vpop.permute.xlu2 %518  ;;  %v511_v47 = vpop.permute.xlu0 %510 }
 0x13a   :  { %v566_v26 = vmul.f32 %v3045_v29, %v519_v54  ;;  %v564_v27 = vmul.f32 %v3045_v29, %v511_v47 }
 0x13b   :  { %v3082_v34 = vadd.f32 %v466_v49, %v3005_v11 }
 0x13c   :  { %v584_v15 = vadd.f32 %v566_v26, %v475_v12  ;;  %v3085_v21 = vadd.f32 %v564_v27, %v3007_v58 }
 0x141   :  { %v531_v13 = vpop.permute.xlu2 %530  ;;  %v495_v63 = vpop.permute.xlu1 %494 }
 0x142   :  { %v560_v38 = vmul.f32 %v3045_v29, %v495_v63  ;;  %v3088_v3 = vpop.permute.xlu0 %522 }
 0x144   :  { %v578_v17 = vadd.f32 %v560_v38, %v3019_v59  ;;  %v3104_v59 = vperm.slane %v2884_v5, 4 }
 0x149   :  { %v3091_v30 = vpop.permute.xlu2 %542  ;;  %v503_v18 = vpop.permute.xlu1 %502 }
 0x14a   :  { %v562_v9 = vmul.f32 %v3045_v29, %v503_v18  ;;  %v3094_v25 = vpop.permute.xlu0 %534 }
 0x14c   :  { %v580_v11 = vadd.f32 %v562_v9, %v2993_v16 }
 0x151   :  { %v3097_v4 = vpop.permute.xlu2 %554  ;;  %v515_v58 = vpop.permute.xlu1 %514 }
 0x152   :  { %v565_v50 = vmul.f32 %v3045_v29, %v515_v58  ;;  %v3100_v12 = vpop.permute.xlu0 %546 }
 0x154   :  { %v583_v32 = vadd.f32 %v565_v50, %v3031_v14 }
 0x159   :  { %v527_v33 = vpop.permute.xlu1 %526  ;;  %v604_v19 = vpop.permute.xlu2 %603 }
 0x15a   :  { %v669_v16 = vmul.f32 %v3104_v59, %v604_v19  ;;  %v596_v2 = vpop.permute.xlu0 %595 }
 0x15b   :  { %v667_v6 = vmul.f32 %v3104_v59, %v596_v2 }
 0x15c   :  { %v687_v35 = vadd.f32 %v669_v16, %v578_v17 }
 0x15d   :  { %v685_v36 = vadd.f32 %v667_v6, %v576_v60 }
 0x15e   :  { %v709_v28 = vadd.f32 %v3109_v1, %v687_v35 }
 0x15f   :  { %v707_v14 = vadd.f32 %v3109_v1, %v685_v36 }
 0x160   :  { %vm727_vm0 = vcmp.ge.f32.partialorder %v709_v28, 0.0  ;;  %v745_v5 = vmul.f32 0.01, %v709_v28 }
 0x161   :  { %vm725_vm1 = vcmp.ge.f32.partialorder %v707_v14, 0.0  ;;  %v743_v56 = vmul.f32 0.01, %v707_v14  ;;  %v539_v23 = vpop.permute.xlu1 %538  ;;  %v612_v24 = vpop.permute.xlu2 %611 }
 0x162   :  { %v763_v62 = vsel %vm727_vm0, %v709_v28, %v745_v5  ;;  %v671_v49 = vmul.f32 %v3104_v59, %v612_v24  ;;  %v616_v54 = vpop.permute.xlu0 %615  ;;  %v569_v5 = vmul.f32 %v3045_v29, %v531_v13 }
 0x163   :  { %v3117_v47 = vmul.f32 %v763_v62, %v2817_v42   ;;  %v761_v26 = vsel %vm725_vm1, %v707_v14, %v743_v56  ;;  %v672_v60 = vmul.f32 %v3104_v59, %v616_v54  ;;  %v568_v56 = vmul.f32 %v3045_v29, %v527_v33 }
 0x164   :  { %v3121_v27 = vmul.f32 %v761_v26, %v2819_v43   ;;  %v689_v63 = vadd.f32 %v671_v49, %v580_v11 }
 0x165   :  { %v690_v38 = vadd.f32 %v672_v60, %v581_v22  ;;  %v587_v60 = vadd.f32 %v569_v5, %v3062_v20 }
 0x166   :  { %v711_v17 = vadd.f32 %v3109_v1, %v689_v63  ;;  %v586_v63 = vadd.f32 %v568_v56, %v3042_v0 }
 0x167   :  { %v712_v18 = vadd.f32 %v3109_v1, %v690_v38 }
 0x168   :  { %vm729_vm2 = vcmp.ge.f32.partialorder %v711_v17, 0.0  ;;  %v747_v9 = vmul.f32 0.01, %v711_v17 }
 0x169   :  { %vm730_vm3 = vcmp.ge.f32.partialorder %v712_v18, 0.0  ;;  %v748_v58 = vmul.f32 0.01, %v712_v18  ;;  %v551_v50 = vpop.permute.xlu1 %550  ;;  %v624_v19 = vpop.permute.xlu2 %623 }
 0x16a   :  { %v765_v16 = vsel %vm729_vm2, %v711_v17, %v747_v9  ;;  %v674_v2 = vmul.f32 %v3104_v59, %v624_v19  ;;  %v628_v6 = vpop.permute.xlu0 %627 }
 0x16b   :  { %v3127_v35 = vmul.f32 %v765_v16, %v2800_v37   ;;  %v766_v36 = vsel %vm730_vm3, %v712_v18, %v748_v58  ;;  %v675_v22 = vmul.f32 %v3104_v59, %v628_v6  ;;  %v572_v16 = vmul.f32 %v3045_v29, %v3091_v30 }
 0x16c   :  { %v3131_v11 = vmul.f32 %v766_v36, %v2804_v39   ;;  %v692_v28 = vadd.f32 %v674_v2, %v583_v32  ;;  %v571_v2 = vmul.f32 %v3045_v29, %v539_v23 }
 0x16d   :  { %v693_v14 = vadd.f32 %v675_v22, %v584_v15 }
 0x16e   :  { %v714_v24 = vadd.f32 %v3109_v1, %v692_v28 }
 0x16f   :  { %v715_v62 = vadd.f32 %v3109_v1, %v693_v14 }
 0x170   :  { %vm732_vm4 = vcmp.ge.f32.partialorder %v714_v24, 0.0  ;;  %v750_v49 = vmul.f32 0.01, %v714_v24 }
 0x171   :  { %vm733_vm5 = vcmp.ge.f32.partialorder %v715_v62, 0.0  ;;  %v751_v54 = vmul.f32 0.01, %v715_v62  ;;  %v636_v26 = vpop.permute.xlu2 %635 }
 0x172   :  { %v768_v38 = vsel %vm732_vm4, %v714_v24, %v750_v49  ;;  %v677_v15 = vmul.f32 %v3104_v59, %v636_v26  ;;  %v600_v32 = vpop.permute.xlu1 %599  ;;  %v640_v13 = vpop.permute.xlu0 %639  ;;  %v589_v24 = vadd.f32 %v571_v2, %v3054_v61 }
 0x173   :  { %v3141_v33 = vmul.f32 %v768_v38, %v2835_v48   ;;  %v769_v17 = vsel %vm733_vm5, %v715_v62, %v751_v54  ;;  %v668_v18 = vmul.f32 %v3104_v59, %v600_v32  ;;  %v678_v9 = vmul.f32 %v3104_v59, %v640_v13 }
 0x174   :  { %v3146_v58 = vmul.f32 %v769_v17, %v2809_v40   ;;  %v695_v19 = vadd.f32 %v677_v15, %v586_v63  ;;  %v575_v32 = vmul.f32 %v3045_v29, %v3097_v4  ;;  %v574_v13 = vmul.f32 %v3045_v29, %v551_v50 }
 0x175   :  { %v686_v20 = vadd.f32 %v668_v18, %v3076_v8  ;;  %v696_v0 = vadd.f32 %v678_v9, %v587_v60  ;;  %v590_v8 = vadd.f32 %v572_v16, %v3073_v31 }
 0x176   :  { %v717_v6 = vadd.f32 %v3109_v1, %v695_v19  ;;  %v593_v16 = vadd.f32 %v575_v32, %v3082_v34  ;;  %v592_v2 = vadd.f32 %v574_v13, %v3065_v10 }
 0x177   :  { %v708_v36 = vadd.f32 %v3109_v1, %v686_v20  ;;  %v718_v22 = vadd.f32 %v3109_v1, %v696_v0 }
 0x178   :  { %vm735_vm6 = vcmp.ge.f32.partialorder %v717_v6, 0.0  ;;  %v753_v28 = vmul.f32 0.01, %v717_v6 }
 0x179   :  { %vm726_vm7 = vcmp.ge.f32.partialorder %v708_v36, 0.0  ;;  %v744_v14 = vmul.f32 0.01, %v708_v36  ;;  %vm736_vm8 = vcmp.ge.f32.partialorder %v718_v22, 0.0  ;;  %v754_v5 = vmul.f32 0.01, %v718_v22  ;;  %v648_v56 = vpop.permute.xlu2 %647 }
 0x17a   :  { %v771_v30 = vsel %vm735_vm6, %v717_v6, %v753_v28  ;;  %v680_v23 = vmul.f32 %v3104_v59, %v648_v56  ;;  %v608_v62 = vpop.permute.xlu1 %607  ;;  %v652_v49 = vpop.permute.xlu0 %651 }
 0x17b   :  { %v3159_v54 = vmul.f32 %v771_v30, %v2842_v51   ;;  %v762_v26 = vsel %vm726_vm7, %v708_v36, %v744_v14  ;;  %v772_v60 = vsel %vm736_vm8, %v718_v22, %v754_v5  ;;  %v670_v63 = vmul.f32 %v3104_v59, %v608_v62 }
 0x17c   :  { %v3163_v38 = vmul.f32 %v762_v26, %v2828_v46   ;;  %v3166_v15 = vmul.f32 %v772_v60, %v2814_v41   ;;  %v698_v31 = vadd.f32 %v680_v23, %v589_v24  ;;  %v681_v61 = vmul.f32 %v3104_v59, %v652_v49 }
 0x17d   :  { %v688_v17 = vadd.f32 %v670_v63, %v3067_v53  ;;  %v567_v49 = vmul.f32 %v3045_v29, %v3088_v3 }
 0x17e   :  { %v720_v18 = vadd.f32 %v3109_v1, %v698_v31  ;;  %v699_v9 = vadd.f32 %v681_v61, %v590_v8 }
 0x17f   :  { %v710_v19 = vadd.f32 %v3109_v1, %v688_v17  ;;  %v585_v13 = vadd.f32 %v567_v49, %v3015_v7 }
 0x180   :  { %vm738_vm9 = vcmp.ge.f32.partialorder %v720_v18, 0.0  ;;  %v756_v20 = vmul.f32 0.01, %v720_v18  ;;  %v721_v0 = vadd.f32 %v3109_v1, %v699_v9 }
 0x181   :  { %vm728_vm10 = vcmp.ge.f32.partialorder %v710_v19, 0.0  ;;  %v746_v6 = vmul.f32 0.01, %v710_v19  ;;  %v660_v4 = vpop.permute.xlu2 %659 }
 0x182   :  { %v774_v36 = vsel %vm738_vm9, %v720_v18, %v756_v20  ;;  %vm739_vm11 = vcmp.ge.f32.partialorder %v721_v0, 0.0  ;;  %v757_v50 = vmul.f32 0.01, %v721_v0  ;;  %v683_v53 = vmul.f32 %v3104_v59, %v660_v4  ;;  %v620_v22 = vpop.permute.xlu1 %619  ;;  %v664_v28 = vpop.permute.xlu0 %663  ;;  %v4047_v18 = vld [vmem:[#allocation10_spill] sm:$0xff] }
 0x183   :  { %v792_v14 = vmul.f32 %v774_v36, %v2849_v55   ;;  %v764_v5 = vsel %vm728_vm10, %v710_v19, %v746_v6  ;;  %v673_v56 = vmul.f32 %v3104_v59, %v620_v22  ;;  %v684_v8 = vmul.f32 %v3104_v59, %v664_v28 }
 0x184   :  { %v3183_v34 = vmul.f32 %v764_v5, %v2826_v45   ;;  %v775_v10 = vsel %vm739_vm11, %v721_v0, %v757_v50  ;;  %v701_v24 = vadd.f32 %v683_v53, %v592_v2  ;;  %v4048_v0 = vld [vmem:[#allocation7_spill] sm:$0xff]  ;;  %v4049_v2 = vld [vmem:[#allocation6_spill] sm:$0xff]  ;;  %v570_v36 = vmul.f32 %v3045_v29, %v3094_v25 }
 0x185   :  { %v793_v30 = vmul.f32 %v775_v10, %v2823_v44   ;;  %v691_v23 = vadd.f32 %v673_v56, %v3085_v21  ;;  %v702_v62 = vadd.f32 %v684_v8, %v593_v16  ;;  %v4050_v56 = vld [vmem:[#allocation8_spill] sm:$0xff] }
 0x186   :  { %v723_v26 = vadd.f32 %v3109_v1, %v701_v24  ;;  %v588_v22 = vadd.f32 %v570_v36, %v3027_v52  ;;  %v573_v24 = vmul.f32 %v3045_v29, %v3100_v12  ;;  %v4051_v52 = vld [vmem:[#allocation9_spill] sm:$0xff] }
 0x187   :  { %v713_v60 = vadd.f32 %v3109_v1, %v691_v23  ;;  %v724_v63 = vadd.f32 %v3109_v1, %v702_v62 }
 0x188   :  { %vm741_vm12 = vcmp.ge.f32.partialorder %v723_v26, 0.0  ;;  %v759_v31 = vmul.f32 0.01, %v723_v26  ;;  %v591_v49 = vadd.f32 %v573_v24, %v3038_v57 }
 0x189   :  { %vm731_vm13 = vcmp.ge.f32.partialorder %v713_v60, 0.0  ;;  %v749_v61 = vmul.f32 0.01, %v713_v60  ;;  %vm742_vm14 = vcmp.ge.f32.partialorder %v724_v63, 0.0  ;;  %v760_v32 = vmul.f32 0.01, %v724_v63 }
 0x18a   :  { %v777_v17 = vsel %vm741_vm12, %v723_v26, %v759_v31  ;;  %v632_v21 = vpop.permute.xlu1 %631 }
 0x18b   :  { %v795_v9 = vmul.f32 %v777_v17, %v4047_v18   ;;  %v767_v19 = vsel %vm731_vm13, %v713_v60, %v749_v61  ;;  %v778_v3 = vsel %vm742_vm14, %v724_v63, %v760_v32  ;;  %v676_v20 = vmul.f32 %v3104_v59, %v632_v21  ;;  %v4052_v17 = vld [vmem:[#allocation11_spill] sm:$0xff] }
 0x18c   :  { %v785_v16 = vmul.f32 %v767_v19, %v4048_v0   ;;  %v796_v6 = vmul.f32 %v778_v3, %v4049_v2  }
 0x18d   :  { %v694_v4 = vadd.f32 %v676_v20, %v585_v13 }
 0x18f   :  { %v716_v50 = vadd.f32 %v3109_v1, %v694_v4 }
 0x191   :  { %vm734_vm15 = vcmp.ge.f32.partialorder %v716_v50, 0.0  ;;  %v752_v7 = vmul.f32 0.01, %v716_v50 }
 0x192   :  { %v644_v53 = vpop.permute.xlu1 %643 }
 0x193   :  { %v770_v28 = vsel %vm734_vm15, %v716_v50, %v752_v7  ;;  %v679_v5 = vmul.f32 %v3104_v59, %v644_v53 }
 0x194   :  { %v788_v8 = vmul.f32 %v770_v28, %v4050_v56  }
 0x195   :  { %v697_v10 = vadd.f32 %v679_v5, %v588_v22 }
 0x197   :  { %v719_v23 = vadd.f32 %v3109_v1, %v697_v10 }
 0x199   :  { %vm737_vm0 = vcmp.ge.f32.partialorder %v719_v23, 0.0  ;;  %v755_v25 = vmul.f32 0.01, %v719_v23 }
 0x19a   :  { %v656_v62 = vpop.permute.xlu1 %655 }
 0x19b   :  { %v773_v26 = vsel %vm737_vm0, %v719_v23, %v755_v25  ;;  %v682_v60 = vmul.f32 %v3104_v59, %v656_v62 }
 0x19c   :  { %v791_v63 = vmul.f32 %v773_v26, %v4051_v52  }
 0x19d   :  { %v700_v31 = vadd.f32 %v682_v60, %v591_v49 }
 0x19f   :  { %v722_v61 = vadd.f32 %v3109_v1, %v700_v31 }
 0x1a1   :  { %vm740_vm1 = vcmp.ge.f32.partialorder %v722_v61, 0.0  ;;  %v758_v32 = vmul.f32 0.01, %v722_v61 }
 0x1a3   :  { %v776_v13 = vsel %vm740_vm1, %v722_v61, %v758_v32 }
 0x1a4   :  { %v794_v29 = vmul.f32 %v776_v13, %v4052_v17  }
 0x1a5 LB: > { %4053 = vst [vmem:[#allocation12_spill] sm:$0xff] %v2513_v6  ;;  %s2200_s11 = smul.u32 160, %s2585_s3  ;;  %v882_v57 = vlaneseq  ;;  %v913_v21 = vrot.slane %v2577_v38, 7  ;;  %v914_v18 = vrot.slane %v2573_v47, 7  ;;  %v915_v19 = vrot.slane %v2569_v34, 7  ;;  %s1639_s17 = scalar_lea.vmem %s4030_s4, %s2585_s3  ;;  %s2585_s3 = sphi %s3257_s3, %s802_s3   ;;  %v2581_v27 = vphi %v3121_v27, %v4110_v27   ;;  %v2577_v38 = vphi %v3163_v38, %v4109_v38   ;;  %v2573_v47 = vphi %v3117_v47, %v4108_v47   ;;  %v2569_v34 = vphi %v3183_v34, %v4107_v34   ;;  %v2565_v35 = vphi %v3127_v35, %v4106_v35   ;;  %v2561_v11 = vphi %v3131_v11, %v4105_v11   ;;  %v2557_v16 = vphi %v785_v16, %v4104_v16   ;;  %v2553_v33 = vphi %v3141_v33, %v4103_v33   ;;  %v2549_v58 = vphi %v3146_v58, %v4102_v58   ;;  %v2545_v8 = vphi %v788_v8, %v4101_v8   ;;  %v2541_v54 = vphi %v3159_v54, %v4100_v54   ;;  %v2537_v15 = vphi %v3166_v15, %v4099_v15   ;;  %v2533_v63 = vphi %v791_v63, %v4098_v63   ;;  %v2529_v14 = vphi %v792_v14, %v4097_v14   ;;  %v2525_v30 = vphi %v793_v30, %v4096_v30   ;;  %v2521_v29 = vphi %v794_v29, %v4095_v29   ;;  %v2517_v9 = vphi %v795_v9, %v4094_v9   ;;  %v2513_v6 = vphi %v796_v6, %v4093_v6  }
 0x1a6   : > { %4054 = vst [vmem:[#allocation13_spill] sm:$0xff] %v2517_v9  ;;  %v919_v20 = vrot.slane %v2553_v33, 7  ;;  %v920_v0 = vrot.slane %v2549_v58, 7  ;;  %v921_v2 = vrot.slane %v2545_v8, 7  ;;  %v925_v4 = vrot.slane %v2529_v14, 7  ;;  %s802_s3 = sadd.s32 1, %s2585_s3  }
 0x1a7   : > { %4055 = vst [vmem:[#allocation14_spill] sm:$0xff] %v2521_v29  ;;  %s3320_s14 = scalar_lea.vmem %s4028_s2, %s2200_s11  ;;  %v3324_v1 = vshrl.u32 %v882_v57, 7  ;;  %v926_v36 = vrot.slane %v2525_v30, 7  ;;  %v927_v50 = vrot.slane %v2521_v29, 7  ;;  %vm982_vm3 = vcmask 523264   ;;  %p3812_p0 = scmp.ge.s32.totalorder %s802_s3, 5  }
 0x1a8   : > { %4056 = vst [vmem:[#allocation15_spill] sm:$0xff] %v2525_v30  ;;  %v2208_v12 = vld [vmem:[%s3320_s14 + $0x38] sm:$0xff]  ;;  %v2207_v59 = vld [vmem:[%s3320_s14 + $0x30] sm:$0xff]  ;;  %v2206_v3 = vld [vmem:[%s3320_s14 + $0x28] sm:$0xff]  ;;  %v929_v52 = vrot.slane %v2513_v6, 7  ;;  %v912_v31 = vrot.slane %v2581_v27, 7 }
 0x1a9   : > { %2221 = vmatpush.bf16.msra.mxu1 %v2208_v12  ;;  %2222 = vmatpush.bf16.msra.mxu2 %v2208_v12  ;;  %vm930_vm2 = vcmp.lt.s32.totalorder %v3324_v1, 1  ;;  %v2205_v53 = vld [vmem:[%s3320_s14 + $0x20] sm:$0xff]  ;;  %v2212_v56 = vld [vmem:[%s3320_s14 + $0x58] sm:$0xff]  ;;  %v2211_v60 = vld [vmem:[%s3320_s14 + $0x50] sm:$0xff]  ;;  %vm1488_vm4 = vcmp.lt.s32.totalorder %v3324_v1, 6  ;;  %vm1319_vm5 = vcmp.lt.s32.totalorder %v3324_v1, 7 }
 0x1aa   : > { %2223 = vmatpush.bf16.msra.mxu3 %v2208_v12  ;;  %1014 = vmatpush.bf16.msra.mxu0 %v2208_v12  ;;  %v945_v7 = vsel %vm930_vm2, %v914_v18, %v915_v19  ;;  %v946_v22 = vsel %vm930_vm2, %v913_v21, %v914_v18  ;;  %v939_v28 = vsel %vm930_vm2, %v920_v0, %v921_v2  ;;  %v2204_v10 = vld [vmem:[%s3320_s14 + $0x18] sm:$0xff]  ;;  %v2203_v61 = vld [vmem:[%s3320_s14 + $0x10] sm:$0xff]  ;;  %v2202_v18 = vld [vmem:[%s3320_s14 + $0x8] sm:$0xff]  ;;  %vm884_vm6 = vcmp.lt.s32.totalorder %v3324_v1, 2  ;;  %s2592_s27 = smov (%p3812_p0), [#allocation2]   ;;  %s1994_s0 = sshll.u32 (%p3812_p0), %s4034_s8, 4  ;;  %s1995_s0 = int_to_ptr.hbm [resolvable:$true] %s1994_s0 }
 0x1ab   : > { %v940_v5 = vsel %vm930_vm2, %v919_v20, %v920_v0  ;;  %v933_v24 = vsel %vm930_vm2, %v926_v36, %v927_v50  ;;  %v934_v23 = vsel %vm930_vm2, %v925_v4, %v926_v36  ;;  %v950_v25 = vpack.c.bf16 %v945_v7, %v946_v22  ;;  %v2216_v49 = vld [vmem:[%s3320_s14 + $0x78] sm:$0xff]  ;;  %v2215_v57 = vld [vmem:[%s3320_s14 + $0x70] sm:$0xff]  ;;  %v2209_v22 = vld [vmem:[%s3320_s14 + $0x40] sm:$0xff]  ;;  %s1992_s28 = sshll.u32 (%p3812_p0), %s2592_s27, 4  ;;  %s1993_s28 = int_to_ptr.vmem [resolvable:$true] %s1992_s28 }
 0x1ac   : > { %v953_v62 = vpack.c.bf16 %v939_v28, %v940_v5  ;;  %v956_v26 = vpack.c.bf16 %v933_v24, %v934_v23  ;;  %v947_v32 = vsel %vm930_vm2, %v912_v31, %v913_v21  ;;  %v948_v13 = vsel %vm930_vm2, %v929_v52, %v912_v31  ;;  %v2220_v17 = vld [vmem:[%s3320_s14 + $0x98] sm:$0xff]  ;;  %v2219_v21 = vld [vmem:[%s3320_s14 + $0x90] sm:$0xff]  ;;  %v2201_v5 = vld [vmem:[%s3320_s14] sm:$0xff] }
 0x1ad   : > { %2224 = vmatpush.bf16.msra.mxu1 %v2207_v59  ;;  %2225 = vmatpush.bf16.msra.mxu2 %v2207_v59  ;;  %v949_v12 = vpack.c.bf16 %v947_v32, %v948_v13  ;;  %v917_v0 = vrot.slane %v2561_v11, 7  ;;  %v922_v36 = vrot.slane %v2541_v54, 7  ;;  %v923_v7 = vrot.slane %v2537_v15, 7  ;;  %v2217_v31 = vld [vmem:[%s3320_s14 + $0x80] sm:$0xff] }
 0x1ae   : > { %2226 = vmatpush.bf16.msra.mxu3 %v2207_v59  ;;  %1015 = vmatpush.bf16.msra.mxu0 %v2207_v59  ;;  %v2210_v59 = vld [vmem:[%s3320_s14 + $0x48] sm:$0xff]  ;;  %v928_v28 = vrot.slane %v2517_v9, 7  ;;  %v1472_v32 = vrot.slane %v2573_v47, 2 }
 0x1af   : > { %v937_v23 = vsel %vm930_vm2, %v922_v36, %v923_v7 }
 0x1b1   : > { %2227 = vmatpush.bf16.msra.mxu1 %v2206_v3  ;;  %2228 = vmatpush.bf16.msra.mxu2 %v2206_v3 }
 0x1b2   : > { %2229 = vmatpush.bf16.msra.mxu3 %v2206_v3  ;;  %1016 = vmatpush.bf16.msra.mxu0 %v2206_v3  ;;  %v916_v3 = vrot.slane %v2565_v35, 7 }
 0x1b4   : > { %v944_v24 = vsel %vm930_vm2, %v915_v19, %v916_v3 }
 0x1b5   : > { %2230 = vmatpush.bf16.msra.mxu1 %v2205_v53  ;;  %2231 = vmatpush.bf16.msra.mxu2 %v2205_v53 }
 0x1b6   : > { %2232 = vmatpush.bf16.msra.mxu3 %v2205_v53  ;;  %1017 = vmatpush.bf16.msra.mxu0 %v2205_v53  ;;  %v2214_v53 = vld [vmem:[%s3320_s14 + $0x68] sm:$0xff] }
 0x1b8   : > { %2083 = vmatmul.msk.bf16.vlgmr.msra.gmra.mxu1 %vm982_vm3, %v950_v25  ;;  %2086 = vmatmul.msk.bf16.vlgmr.msra.gmra.mxu2 %vm982_vm3, %v953_v62  ;;  %v938_v25 = vsel %vm930_vm2, %v921_v2, %v922_v36  ;;  %v2213_v62 = vld [vmem:[%s3320_s14 + $0x60] sm:$0xff]  ;;  %v1471_v2 = vrot.slane %v2577_v38, 2 }
 0x1b9   : > { %1233 = vmatpush.bf16.msrb.mxu2 %v2212_v56  ;;  %1119 = vmatpush.bf16.msrb.mxu1 %v2204_v10  ;;  %v2218_v56 = vld [vmem:[%s3320_s14 + $0x88] sm:$0xff]  ;;  %v943_v10 = vsel %vm930_vm2, %v916_v3, %v917_v0 }
 0x1ba   : > { %1402 = vmatpush.bf16.msrb.mxu3 %v2216_v49  ;;  %2082 = vmatmul.msk.bf16.vlgmr.msra.gmra.mxu0 %vm982_vm3, %v949_v12  ;;  %v931_v49 = vsel %vm930_vm2, %v928_v28, %v929_v52  ;;  %v951_v19 = vpack.c.bf16 %v943_v10, %v944_v24  ;;  %v1504_v52 = vsel %vm1488_vm4, %v1471_v2, %v1472_v32  ;;  %v924_v12 = vrot.slane %v2533_v63, 7 }
 0x1bb   : > { %2089 = vmatmul.msk.bf16.vlgmr.msra.gmra.mxu3 %vm982_vm3, %v956_v26  ;;  %1571 = vmatpush.bf16.msrb.mxu0 %v2220_v17  ;;  %v932_v26 = vsel %vm930_vm2, %v927_v50, %v928_v28  ;;  %v1474_v10 = vrot.slane %v2565_v35, 2 }
 0x1bc   : > { %v957_v13 = vpack.c.bf16 %v931_v49, %v932_v26  ;;  %v881_v49 = vrot.slane %v2513_v6, 6  ;;  %v1304_v26 = vrot.slane %v2569_v34, 1 }
 0x1bd   : > { %1234 = vmatpush.bf16.msrb.mxu2 %v2211_v60  ;;  %1120 = vmatpush.bf16.msrb.mxu1 %v2203_v61  ;;  %v954_v60 = vpack.c.bf16 %v937_v23, %v938_v25  ;;  %v1470_v61 = vrot.slane %v2581_v27, 2  ;;  %v864_v25 = vrot.slane %v2581_v27, 6 }
 0x1be   : > { %1403 = vmatpush.bf16.msrb.mxu3 %v2215_v57  ;;  %v918_v57 = vrot.slane %v2557_v16, 7 }
 0x1bf   : > { %1572 = vmatpush.bf16.msrb.mxu0 %v2219_v21  ;;  %v1505_v50 = vsel %vm1488_vm4, %v1470_v61, %v1471_v2  ;;  %v1303_v21 = vrot.slane %v2573_v47, 1 }
 0x1c0   : > { %v1507_v17 = vpack.c.bf16 %v1504_v52, %v1505_v50  ;;  %v941_v3 = vsel %vm930_vm2, %v918_v57, %v919_v20  ;;  %v942_v36 = vsel %vm930_vm2, %v917_v0, %v918_v57  ;;  %v1473_v0 = vrot.slane %v2569_v34, 2 }
 0x1c1   : > { %1235 = vmatpush.bf16.msrb.mxu2 %v2210_v59  ;;  %1121 = vmatpush.bf16.msrb.mxu1 %v2202_v18  ;;  %v1301_v59 = vrot.slane %v2581_v27, 1  ;;  %v1302_v18 = vrot.slane %v2577_v38, 1  ;;  %v952_v20 = vpack.c.bf16 %v941_v3, %v942_v36  ;;  %v1169_v52 = vpack.c.bf16 %v2577_v38, %v2581_v27 }
 0x1c2   : > { %1404 = vmatpush.bf16.msrb.mxu3 %v2214_v53  ;;  %v935_v53 = vsel %vm930_vm2, %v924_v12, %v925_v4  ;;  %v1502_v4 = vsel %vm1488_vm4, %v1473_v0, %v1474_v10  ;;  %v1475_v50 = vrot.slane %v2561_v11, 2  ;;  %v866_v3 = vrot.slane %v2573_v47, 6 }
 0x1c3   : > { %1573 = vmatpush.bf16.msrb.mxu0 %v2218_v56  ;;  %v1335_v28 = vsel %vm1319_vm5, %v1302_v18, %v1303_v21  ;;  %v867_v36 = vrot.slane %v2569_v34, 6 }
 0x1c5   : > { %1236 = vmatpush.bf16.msrb.mxu2 %v2209_v22  ;;  %1122 = vmatpush.bf16.msrb.mxu1 %v2201_v5  ;;  %v936_v22 = vsel %vm930_vm2, %v923_v7, %v924_v12  ;;  %v1336_v5 = vsel %vm1319_vm5, %v1301_v59, %v1302_v18  ;;  %v1503_v7 = vsel %vm1488_vm4, %v1472_v32, %v1473_v0 }
 0x1c6   : > { %1405 = vmatpush.bf16.msrb.mxu3 %v2213_v62  ;;  %v955_v56 = vpack.c.bf16 %v935_v53, %v936_v22  ;;  %v1338_v24 = vpack.c.bf16 %v1335_v28, %v1336_v5  ;;  %v1508_v23 = vpack.c.bf16 %v1502_v4, %v1503_v7  ;;  %v865_v62 = vrot.slane %v2577_v38, 6 }
 0x1c7   : > { %1574 = vmatpush.bf16.msrb.mxu0 %v2217_v31  ;;  %v902_v31 = vsel %vm884_vm6, %v881_v49, %v864_v25  ;;  %v1334_v32 = vsel %vm1319_vm5, %v1303_v21, %v1304_v26  ;;  %v1501_v18 = vsel %vm1488_vm4, %v1474_v10, %v1475_v50  ;;  %v1306_v53 = vrot.slane %v2561_v11, 1 }
 0x1c8   : > { %2084 = vmatmul.msk.bf16.gmra.mxu1 %vm982_vm3, %v951_v19  ;;  %2087 = vmatmul.msk.bf16.gmra.mxu2 %vm982_vm3, %v954_v60  ;;  %v1305_v19 = vrot.slane %v2565_v35, 1  ;;  %v901_v60 = vsel %vm884_vm6, %v864_v25, %v865_v62  ;;  %v1307_v22 = vrot.slane %v2557_v16, 1  ;;  %v899_v28 = vsel %vm884_vm6, %v866_v3, %v867_v36 }
 0x1c9   : > { %v900_v5 = vsel %vm884_vm6, %v865_v62, %v866_v3  ;;  %v1170_v10 = vpack.c.bf16 %v2569_v34, %v2573_v47  ;;  %v1478_v4 = vrot.slane %v2549_v58, 2 }
 0x1ca   : > { %2182 = vmatmul.msk.bf16.vlgmr.msrb.gmra.mxu0 %vm982_vm3, %v1507_v17  ;;  %v1333_v2 = vsel %vm1319_vm5, %v1304_v26, %v1305_v19  ;;  %v1476_v17 = vrot.slane %v2557_v16, 2  ;;  %v904_v0 = vpack.c.bf16 %v899_v28, %v900_v5  ;;  %v868_v26 = vrot.slane %v2565_v35, 6 }
 0x1cb   : > { %2090 = vmatmul.msk.bf16.gmra.mxu3 %vm982_vm3, %v957_v13  ;;  %v903_v13 = vpack.c.bf16 %v901_v60, %v902_v31  ;;  %v1339_v57 = vpack.c.bf16 %v1333_v2, %v1334_v32  ;;  %v1308_v60 = vrot.slane %v2553_v33, 1  ;;  %v1309_v31 = vrot.slane %v2549_v58, 1 }
 0x1cc   : > { %v1500_v12 = vsel %vm1488_vm4, %v1475_v50, %v1476_v17  ;;  %v898_v32 = vsel %vm884_vm6, %v867_v36, %v868_v26  ;;  %v1310_v28 = vrot.slane %v2545_v8, 1  ;;  %v1311_v5 = vrot.slane %v2541_v54, 1 }
 0x1cd   : > { %v1509_v21 = vpack.c.bf16 %v1500_v12, %v1501_v18  ;;  %v1480_v12 = vrot.slane %v2541_v54, 2 }
 0x1d8   : > { %2085 = vmatmul.msk.bf16.gmra.mxu1 %vm982_vm3, %v952_v20  ;;  %2088 = vmatmul.msk.bf16.gmra.mxu2 %vm982_vm3, %v955_v56  ;;  %v1331_v20 = vsel %vm1319_vm5, %v1306_v53, %v1307_v22  ;;  %v1332_v56 = vsel %vm1319_vm5, %v1305_v19, %v1306_v53  ;;  %v869_v19 = vrot.slane %v2561_v11, 6  ;;  %v870_v53 = vrot.slane %v2557_v16, 6 }
 0x1d9   : > { %v1340_v7 = vpack.c.bf16 %v1331_v20, %v1332_v56 }
 0x1da   : > { %2183 = vmatmul.msk.bf16.gmra.mxu0 %vm982_vm3, %v1508_v23  ;;  %v897_v2 = vsel %vm884_vm6, %v868_v26, %v869_v19  ;;  %v896_v56 = vsel %vm884_vm6, %v869_v19, %v870_v53 }
 0x1db   : > { %2157 = vmatmul.msk.bf16.vlgmr.msrb.gmra.mxu3 %vm982_vm3, %v1338_v24  ;;  %v1477_v24 = vrot.slane %v2553_v33, 2  ;;  %v905_v50 = vpack.c.bf16 %v897_v2, %v898_v32  ;;  %v1312_v2 = vrot.slane %v2537_v15, 1  ;;  %v1313_v32 = vrot.slane %v2533_v63, 1 }
 0x1dd   : > { %v1498_v23 = vsel %vm1488_vm4, %v1477_v24, %v1478_v4  ;;  %v1499_v25 = vsel %vm1488_vm4, %v1476_v17, %v1477_v24  ;;  %v1171_v17 = vpack.c.bf16 %v2561_v11, %v2565_v35 }
 0x1de   : > { %v1510_v62 = vpack.c.bf16 %v1498_v23, %v1499_v25  ;;  %v1482_v23 = vrot.slane %v2533_v63, 2 }
 0x1e8   : > { %2107 = vmatmul.msk.bf16.vlgmr.msrb.gmra.mxu1 %vm982_vm3, %v903_v13  ;;  %2132 = vmatmul.msk.bf16.vlgmr.msrb.gmra.mxu2 %vm982_vm3, %v1169_v52  ;;  %v1329_v13 = vsel %vm1319_vm5, %v1308_v60, %v1309_v31  ;;  %v1330_v52 = vsel %vm1319_vm5, %v1307_v22, %v1308_v60  ;;  %v871_v22 = vrot.slane %v2553_v33, 6  ;;  %v872_v60 = vrot.slane %v2549_v58, 6 }
 0x1e9   : > { %v1341_v18 = vpack.c.bf16 %v1329_v13, %v1330_v52 }
 0x1ea   : > { %2184 = vmatmul.msk.bf16.gmra.mxu0 %vm982_vm3, %v1509_v21  ;;  %v895_v20 = vsel %vm884_vm6, %v870_v53, %v871_v22  ;;  %v894_v52 = vsel %vm884_vm6, %v871_v22, %v872_v60 }
 0x1eb   : > { %2158 = vmatmul.msk.bf16.gmra.mxu3 %vm982_vm3, %v1339_v57  ;;  %v1479_v57 = vrot.slane %v2545_v8, 2  ;;  %v906_v24 = vpack.c.bf16 %v895_v20, %v896_v56  ;;  %v1314_v20 = vrot.slane %v2529_v14, 1  ;;  %v1315_v56 = vrot.slane %v2525_v30, 1 }
 0x1ed   : > { %v1496_v21 = vsel %vm1488_vm4, %v1479_v57, %v1480_v12  ;;  %v1497_v3 = vsel %vm1488_vm4, %v1478_v4, %v1479_v57  ;;  %v1172_v4 = vpack.c.bf16 %v2553_v33, %v2557_v16 }
 0x1ee   : > { %v1511_v36 = vpack.c.bf16 %v1496_v21, %v1497_v3  ;;  %v1484_v21 = vrot.slane %v2525_v30, 2 }
 0x1f8   : > { %2108 = vmatmul.msk.bf16.gmra.mxu1 %vm982_vm3, %v904_v0  ;;  %2133 = vmatmul.msk.bf16.gmra.mxu2 %vm982_vm3, %v1170_v10  ;;  %v1327_v0 = vsel %vm1319_vm5, %v1310_v28, %v1311_v5  ;;  %v1328_v10 = vsel %vm1319_vm5, %v1309_v31, %v1310_v28  ;;  %v873_v31 = vrot.slane %v2545_v8, 6  ;;  %v874_v28 = vrot.slane %v2541_v54, 6 }
 0x1f9   : > { %v1342_v25 = vpack.c.bf16 %v1327_v0, %v1328_v10 }
 0x1fa   : > { %2185 = vmatmul.msk.bf16.gmra.mxu0 %vm982_vm3, %v1510_v62  ;;  %v893_v13 = vsel %vm884_vm6, %v872_v60, %v873_v31  ;;  %v892_v10 = vsel %vm884_vm6, %v873_v31, %v874_v28 }
 0x1fb   : > { %2159 = vmatmul.msk.bf16.gmra.mxu3 %vm982_vm3, %v1340_v7  ;;  %v1481_v7 = vrot.slane %v2537_v15, 2  ;;  %v907_v57 = vpack.c.bf16 %v893_v13, %v894_v52 }
 0x1fd   : > { %v1494_v62 = vsel %vm1488_vm4, %v1481_v7, %v1482_v23  ;;  %v1495_v26 = vsel %vm1488_vm4, %v1480_v12, %v1481_v7  ;;  %v1173_v12 = vpack.c.bf16 %v2545_v8, %v2549_v58 }
 0x1fe   : > { %v1512_v19 = vpack.c.bf16 %v1494_v62, %v1495_v26  ;;  %v1485_v62 = vrot.slane %v2521_v29, 2  ;;  %v1486_v26 = vrot.slane %v2517_v9, 2 }
 0x200   : > { %v1490_v60 = vsel %vm1488_vm4, %v1485_v62, %v1486_v26  ;;  %v1491_v31 = vsel %vm1488_vm4, %v1484_v21, %v1485_v62 }
 0x208   : > { %2109 = vmatmul.msk.bf16.gmra.mxu1 %vm982_vm3, %v905_v50  ;;  %2134 = vmatmul.msk.bf16.gmra.mxu2 %vm982_vm3, %v1171_v17  ;;  %v1325_v50 = vsel %vm1319_vm5, %v1312_v2, %v1313_v32  ;;  %v1326_v17 = vsel %vm1319_vm5, %v1311_v5, %v1312_v2  ;;  %v875_v5 = vrot.slane %v2537_v15, 6 }
 0x209   : > { %v1343_v3 = vpack.c.bf16 %v1325_v50, %v1326_v17  ;;  %v876_v17 = vrot.slane %v2533_v63, 6 }
 0x20a   : > { %2186 = vmatmul.msk.bf16.gmra.mxu0 %vm982_vm3, %v1511_v36  ;;  %v891_v0 = vsel %vm884_vm6, %v874_v28, %v875_v5 }
 0x20b   : > { %2160 = vmatmul.msk.bf16.gmra.mxu3 %vm982_vm3, %v1341_v18  ;;  %v1483_v18 = vrot.slane %v2529_v14, 2  ;;  %v908_v7 = vpack.c.bf16 %v891_v0, %v892_v10  ;;  %v1175_v0 = vpack.c.bf16 %v2529_v14, %v2533_v63 }
 0x20d   : > { %v1492_v36 = vsel %vm1488_vm4, %v1483_v18, %v1484_v21  ;;  %v1493_v53 = vsel %vm1488_vm4, %v1482_v23, %v1483_v18  ;;  %v1174_v23 = vpack.c.bf16 %v2537_v15, %v2541_v54  ;;  %v1317_v18 = vrot.slane %v2517_v9, 1 }
 0x20e   : > { %v1513_v22 = vpack.c.bf16 %v1492_v36, %v1493_v53 }
 0x218   : > { %2110 = vmatmul.msk.bf16.gmra.mxu1 %vm982_vm3, %v906_v24  ;;  %2135 = vmatmul.msk.bf16.gmra.mxu2 %vm982_vm3, %v1172_v4  ;;  %v1323_v24 = vsel %vm1319_vm5, %v1314_v20, %v1315_v56  ;;  %v1324_v4 = vsel %vm1319_vm5, %v1313_v32, %v1314_v20  ;;  %v1514_v32 = vpack.c.bf16 %v1490_v60, %v1491_v31  ;;  %v878_v31 = vrot.slane %v2525_v30, 6 }
 0x21a   : > { %2187 = vmatmul.msk.bf16.gmra.mxu0 %vm982_vm3, %v1512_v19  ;;  %v1344_v19 = vpack.c.bf16 %v1323_v24, %v1324_v4  ;;  %v1487_v4 = vrot.slane %v2513_v6, 2 }
 0x21b   : > { %2161 = vmatmul.msk.bf16.gmra.mxu3 %vm982_vm3, %v1342_v25 }
 0x228   : > { %2111 = vmatmul.msk.bf16.gmra.mxu1 %vm982_vm3, %v907_v57  ;;  %2136 = vmatmul.msk.bf16.gmra.mxu2 %vm982_vm3, %v1173_v12  ;;  %v877_v57 = vrot.slane %v2529_v14, 6  ;;  %v1316_v12 = vrot.slane %v2521_v29, 1 }
 0x22a   : > { %2188 = vmatmul.msk.bf16.gmra.mxu0 %vm982_vm3, %v1513_v22  ;;  %v889_v21 = vsel %vm884_vm6, %v876_v17, %v877_v57  ;;  %v1321_v22 = vsel %vm1319_vm5, %v1316_v12, %v1317_v18  ;;  %v1322_v28 = vsel %vm1319_vm5, %v1315_v56, %v1316_v12  ;;  %v888_v12 = vsel %vm884_vm6, %v877_v57, %v878_v31 }
 0x22b   : > { %2162 = vmatmul.msk.bf16.gmra.mxu3 %vm982_vm3, %v1343_v3  ;;  %v890_v3 = vsel %vm884_vm6, %v875_v5, %v876_v17  ;;  %v1345_v5 = vpack.c.bf16 %v1321_v22, %v1322_v28 }
 0x22c   : > { %v909_v20 = vpack.c.bf16 %v889_v21, %v890_v3 }
 0x235   : > { %v3599_v25 = vpop.f32.mrf.mxu1 }
 0x237   : > { %v3609_v2 = vpop.f32.mrf.mxu0 }
 0x238   : > { %2112 = vmatmul.msk.bf16.gmra.mxu1 %vm982_vm3, %v908_v7  ;;  %2137 = vmatmul.msk.bf16.gmra.mxu2 %vm982_vm3, %v1174_v23  ;;  %v1489_v7 = vsel %vm1488_vm4, %v1486_v26, %v1487_v4  ;;  %v1506_v23 = vsel %vm1488_vm4, %v1487_v4, %v1470_v61  ;;  %v879_v61 = vrot.slane %v2521_v29, 6 }
 0x239   : > { %v1515_v56 = vpack.c.bf16 %v1506_v23, %v1489_v7  ;;  %v880_v23 = vrot.slane %v2517_v9, 6 }
 0x23a   : > { %2189 = vmatmul.msk.bf16.gmra.mxu0 %vm982_vm3, %v1514_v32  ;;  %v1318_v32 = vrot.slane %v2513_v6, 1  ;;  %v887_v17 = vsel %vm884_vm6, %v878_v31, %v879_v61 }
 0x23b   : > { %2163 = vmatmul.msk.bf16.gmra.mxu3 %vm982_vm3, %v1344_v19  ;;  %v3612_v13 = vpop.f32.mrf.mxu2  ;;  %v910_v28 = vpack.c.bf16 %v887_v17, %v888_v12  ;;  %v885_v31 = vsel %vm884_vm6, %v880_v23, %v881_v49 }
 0x23c   : > { %v1320_v3 = vsel %vm1319_vm5, %v1317_v18, %v1318_v32  ;;  %v1337_v22 = vsel %vm1319_vm5, %v1318_v32, %v1301_v59  ;;  %v886_v32 = vsel %vm884_vm6, %v879_v61, %v880_v23  ;;  %v3703_v23 = vld [vmem:[%s1639_s17] ss:$0 sm:$0xff] }
 0x23d   : > { %v3615_v52 = vpop.f32.mrf.mxu1  ;;  %v911_v12 = vpack.c.bf16 %v885_v31, %v886_v32 }
 0x23e   : > { %v3617_v50 = vpop.f32.mrf.mxu3 }
 0x23f   : > { %v1021_v36 = vpop.f32.mrf.mxu0 }
 0x243   : > { %v3627_v53 = vpop.f32.mrf.mxu2 }
 0x245   : > { %v3635_v10 = vpop.f32.mrf.mxu1 }
 0x246   : > { %v3637_v24 = vpop.f32.mrf.mxu3 }
 0x247   : > { %4057 = vst [vmem:[#allocation16_spill] sm:$0xff] %v3637_v24  ;;  %v1576_v19 = vpop.f32.mrf.mxu0 }
 0x248   : > { %2113 = vmatmul.msk.bf16.gmra.mxu1 %vm982_vm3, %v909_v20  ;;  %2138 = vmatmul.msk.bf16.gmra.mxu2 %vm982_vm3, %v1175_v0  ;;  %v1176_v20 = vpack.c.bf16 %v2521_v29, %v2525_v30 }
 0x24a   : > { %2190 = vmatmul.msk.bf16.gmra.mxu0 %vm982_vm3, %v1515_v56 }
 0x24b   : > { %2164 = vmatmul.msk.bf16.gmra.mxu3 %vm982_vm3, %v1345_v5  ;;  %v3649_v62 = vpop.f32.mrf.mxu2  ;;  %v1346_v5 = vpack.c.bf16 %v1337_v22, %v1320_v3  ;;  %v1177_v3 = vpack.c.bf16 %v2513_v6, %v2517_v9 }
 0x24d   : > { %v3652_v60 = vpop.f32.mrf.mxu1 }
 0x24e   : > { %v3654_v26 = vpop.f32.mrf.mxu3 }
 0x24f   : > { %4058 = vst [vmem:[#allocation17_spill] sm:$0xff] %v3654_v26  ;;  %v1578_v57 = vpop.f32.mrf.mxu0 }
 0x253   : > { %v3663_v21 = vpop.f32.mrf.mxu2 }
 0x255   : > { %v3673_v0 = vpop.f32.mrf.mxu1 }
 0x256   : > { %v3675_v4 = vpop.f32.mrf.mxu3 }
 0x257   : > { %4059 = vst [vmem:[#allocation18_spill] sm:$0xff] %v3675_v4  ;;  %v1581_v56 = vpop.f32.mrf.mxu0 }
 0x258   : > { %2114 = vmatmul.msk.bf16.gmra.mxu1 %vm982_vm3, %v910_v28  ;;  %2139 = vmatmul.msk.bf16.gmra.mxu2 %vm982_vm3, %v1176_v20 }
 0x25b   : > { %2165 = vmatmul.msk.bf16.gmra.mxu3 %vm982_vm3, %v1346_v5  ;;  %v3680_v18 = vpop.f32.mrf.mxu2 }
 0x25d   : > { %v3682_v7 = vpop.f32.mrf.mxu1 }
 0x25e   : > { %v1407_v59 = vpop.f32.mrf.mxu3 }
 0x25f   : > { %v1583_v5 = vpop.f32.mrf.mxu0 }
 0x263   : > { %v3691_v17 = vpop.f32.mrf.mxu2 }
 0x265   : > { %v1124_v22 = vpop.f32.mrf.mxu1 }
 0x266   : > { %v1409_v28 = vpop.f32.mrf.mxu3  ;;  %v1125_v20 = vadd.f32 %v1124_v22, %v3609_v2 }
 0x267   : > { %v1586_v6 = vpop.f32.mrf.mxu0 }
 0x268   : > { %2115 = vmatmul.msk.bf16.gmra.mxu1 %vm982_vm3, %v911_v12  ;;  %2140 = vmatmul.msk.bf16.gmra.mxu2 %vm982_vm3, %v1177_v3 }
 0x26b   : > { %v1238_v49 = vpop.f32.mrf.mxu2 }
 0x26c   : > { %v1283_v4 = vadd.f32 %v1238_v49, %v1125_v20 }
 0x26d   : > { %v1126_v1 = vpop.f32.mrf.mxu1 }
 0x26e   : > { %v1412_v29 = vpop.f32.mrf.mxu3  ;;  %v1452_v61 = vadd.f32 %v1407_v59, %v1283_v4  ;;  %v1127_v31 = vadd.f32 %v1126_v1, %v1021_v36 }
 0x270   : > { %v1621_v32 = vadd.f32 %v1576_v19, %v1452_v61 }
 0x272   : > { %v1644_v2 = vadd.f32 %v3703_v23, %v1621_v32 }
 0x273   : > { %v1240_v22 = vpop.f32.mrf.mxu2 }
 0x274   : > { %vm1662_vm7 = vcmp.ge.f32.partialorder %v1644_v2, 0.0  ;;  %v1680_v12 = vmul.f32 0.01, %v1644_v2  ;;  %v1284_v3 = vadd.f32 %v1240_v22, %v1127_v31 }
 0x275   : > { %v1129_v9 = vpop.f32.mrf.mxu1 }
 0x276   : > { %v1414_v20 = vpop.f32.mrf.mxu3  ;;  %v1698_v49 = vsel %vm1662_vm7, %v1644_v2, %v1680_v12  ;;  %v1453_v26 = vadd.f32 %v1409_v28, %v1284_v3  ;;  %v1130_v4 = vadd.f32 %v1129_v9, %v3599_v25  ;;  %v1588_v2 = vpop.f32.mrf.mxu0 }
 0x277   : > { %v1716_v59 = vmul.f32 %v1698_v49, %v2819_v43  ;;  %v1753_v43 = vld [vmem:[%s4032_s6 + $0x8] sm:$0xff] (%p3812_p0) }
 0x278   : > { %v1622_v30 = vadd.f32 %v1578_v57, %v1453_v26 }
 0x279   : > { %v3709_v27 = vadd.f32 %v2581_v27, %v1716_v59  }
 0x27a   : > { %v1645_v19 = vadd.f32 %v3703_v23, %v1622_v30 }
 0x27b   : > { %v4060_v36 = vmov %v3709_v27  ;;  %v1243_v1 = vpop.f32.mrf.mxu2 }
 0x27c   : > { %vm1663_vm8 = vcmp.ge.f32.partialorder %v1645_v19, 0.0  ;;  %v1681_v61 = vmul.f32 0.01, %v1645_v19  ;;  %v1285_v32 = vadd.f32 %v1243_v1, %v1130_v4 }
 0x27d   : > { %v1131_v31 = vpop.f32.mrf.mxu1 }
 0x27e   : > { %v1417_v22 = vpop.f32.mrf.mxu3  ;;  %v1699_v44 = vsel %vm1663_vm8, %v1645_v19, %v1681_v61  ;;  %v1454_v24 = vadd.f32 %v1412_v29, %v1285_v32  ;;  %v1132_v28 = vadd.f32 %v1131_v31, %v3615_v52 }
 0x27f   : > { %v1717_v9 = vmul.f32 %v1699_v44, %v2828_v46  ;;  %v1591_v44 = vpop.f32.mrf.mxu0 }
 0x280   : > { %v1623_v25 = vadd.f32 %v1581_v56, %v1454_v24 }
 0x281   : > { %v3715_v38 = vadd.f32 %v2577_v38, %v1717_v9  }
 0x282   : > { %v1646_v27 = vadd.f32 %v3703_v23, %v1623_v25 }
 0x283   : > { %v4061_v26 = vmov %v3715_v38  ;;  %v1245_v30 = vpop.f32.mrf.mxu2 }
 0x284   : > { %vm1664_vm9 = vcmp.ge.f32.partialorder %v1646_v27, 0.0  ;;  %v1682_v57 = vmul.f32 0.01, %v1646_v27  ;;  %v1286_v12 = vadd.f32 %v1245_v30, %v1132_v28 }
 0x285   : > { %v1134_v3 = vpop.f32.mrf.mxu1 }
 0x286   : > { %v1419_v49 = vpop.f32.mrf.mxu3  ;;  %v1700_v4 = vsel %vm1664_vm9, %v1646_v27, %v1682_v57  ;;  %v1455_v59 = vadd.f32 %v1414_v20, %v1286_v12  ;;  %v1135_v29 = vadd.f32 %v1134_v3, %v3635_v10 }
 0x287   : > { %v1718_v52 = vmul.f32 %v1700_v4, %v2817_v42  ;;  %v1593_v27 = vpop.f32.mrf.mxu0 }
 0x288   : > { %v1624_v19 = vadd.f32 %v1583_v5, %v1455_v59 }
 0x289   : > { %v3721_v47 = vadd.f32 %v2573_v47, %v1718_v52  }
 0x28a   : > { %v1647_v38 = vadd.f32 %v3703_v23, %v1624_v19 }
 0x28b   : > { %v4062_v24 = vmov %v3721_v47  ;;  %v1248_v56 = vpop.f32.mrf.mxu2 }
 0x28c   : > { %vm1665_vm10 = vcmp.ge.f32.partialorder %v1647_v38, 0.0  ;;  %v1683_v1 = vmul.f32 0.01, %v1647_v38  ;;  %v1287_v61 = vadd.f32 %v1248_v56, %v1135_v29 }
 0x28d   : > { %v1136_v32 = vpop.f32.mrf.mxu1 }
 0x28e   : > { %v1422_v31 = vpop.f32.mrf.mxu3  ;;  %v1701_v28 = vsel %vm1665_vm10, %v1647_v38, %v1683_v1  ;;  %v1456_v9 = vadd.f32 %v1417_v22, %v1287_v61  ;;  %v1137_v20 = vadd.f32 %v1136_v32, %v3652_v60  ;;  %vm1978_vm10 = vcmask (%p3812_p0), 1040384  }
 0x28f   : > { %v1719_v10 = vmul.f32 %v1701_v28, %v2826_v45  ;;  %v1596_v1 = vpop.f32.mrf.mxu0 }
 0x290   : > { %v1625_v25 = vadd.f32 %v1586_v6, %v1456_v9 }
 0x291   : > { %v3727_v34 = vadd.f32 %v2569_v34, %v1719_v10  }
 0x292   : > { %v1648_v47 = vadd.f32 %v3703_v23, %v1625_v25 }
 0x293   : > { %v4063_v5 = vmov %v3727_v34  ;;  %v1250_v30 = vpop.f32.mrf.mxu2 }
 0x294   : > { %vm1666_vm11 = vcmp.ge.f32.partialorder %v1648_v47, 0.0  ;;  %v1684_v57 = vmul.f32 0.01, %v1648_v47  ;;  %v1288_v12 = vadd.f32 %v1250_v30, %v1137_v20 }
 0x295   : > { %v1139_v3 = vpop.f32.mrf.mxu1 }
 0x296   : > { %v1424_v4 = vpop.f32.mrf.mxu3  ;;  %v1702_v59 = vsel %vm1666_vm11, %v1648_v47, %v1684_v57  ;;  %v1457_v29 = vadd.f32 %v1419_v49, %v1288_v12  ;;  %v1140_v22 = vadd.f32 %v1139_v3, %v3673_v0  ;;  %vm1985_vm11 = vcmask (%p3812_p0), 9216  }
 0x297   : > { %v1720_v60 = vmul.f32 %v1702_v59, %v2800_v37  ;;  %v4066_v59 = vld [vmem:[#allocation7_spill] sm:$0xff]  ;;  %v3892_v37 = vld [vmem:[%s4032_s6 + $0x28] sm:$0xff] (%p3812_p0) }
 0x298   : > { %v1626_v52 = vadd.f32 %v1588_v2, %v1457_v29  ;;  %v1598_v29 = vpop.f32.mrf.mxu0 }
 0x299   : > { %v3733_v35 = vadd.f32 %v2565_v35, %v1720_v60  }
 0x29a   : > { %v1649_v34 = vadd.f32 %v3703_v23, %v1626_v52 }
 0x29b   : > { %v4064_v19 = vmov %v3733_v35  ;;  %v1253_v6 = vpop.f32.mrf.mxu2 }
 0x29c   : > { %vm1667_vm12 = vcmp.ge.f32.partialorder %v1649_v34, 0.0  ;;  %v1685_v38 = vmul.f32 0.01, %v1649_v34  ;;  %v1289_v56 = vadd.f32 %v1253_v6, %v1140_v22 }
 0x29d   : > { %v1141_v61 = vpop.f32.mrf.mxu1 }
 0x29e   : > { %v1427_v32 = vpop.f32.mrf.mxu3  ;;  %v1703_v28 = vsel %vm1667_vm12, %v1649_v34, %v1685_v38  ;;  %v1458_v9 = vadd.f32 %v1422_v31, %v1289_v56  ;;  %v1142_v49 = vadd.f32 %v1141_v61, %v3682_v7 }
 0x29f   : > { %v1721_v0 = vmul.f32 %v1703_v28, %v2804_v39  ;;  %v1755_v39 = vld [vmem:[%s4032_s6 + $0x18] sm:$0xff] (%p3812_p0) }
 0x2a0   : > { %v1627_v20 = vadd.f32 %v1591_v44, %v1458_v9  ;;  %v1774_v46 = vmul.f32 (%p3812_p0), %v1755_v39, %v4063_v5 }
 0x2a1   : > { %v3739_v11 = vadd.f32 %v2561_v11, %v1721_v0  }
 0x2a2   : > { %v1650_v35 = vadd.f32 %v3703_v23, %v1627_v20 }
 0x2a3   : > { %v4065_v2 = vmov %v3739_v11  ;;  %v1255_v10 = vpop.f32.mrf.mxu2 }
 0x2a4   : > { %vm1668_vm13 = vcmp.ge.f32.partialorder %v1650_v35, 0.0  ;;  %v1686_v25 = vmul.f32 0.01, %v1650_v35  ;;  %v1290_v47 = vadd.f32 %v1255_v10, %v1142_v49  ;;  %v1776_v45 = vmul.f32 (%p3812_p0), %v3892_v37, %v4065_v2 }
 0x2a5   : > { %v1144_v30 = vpop.f32.mrf.mxu1 }
 0x2a6   : > { %v1429_v57 = vpop.f32.mrf.mxu3  ;;  %v1704_v12 = vsel %vm1668_vm13, %v1650_v35, %v1686_v25  ;;  %v1459_v3 = vadd.f32 %v1424_v4, %v1290_v47  ;;  %v1145_v11 = vadd.f32 %v1144_v30, %v3612_v13 }
 0x2a7   : > { %v1722_v31 = vmul.f32 %v1704_v12, %v4066_v59 }
 0x2a8   : > { %v1628_v7 = vadd.f32 %v1593_v27, %v1459_v3  ;;  %v1601_v27 = vpop.f32.mrf.mxu0 }
 0x2a9   : > { %v3744_v16 = vadd.f32 %v2557_v16, %v1722_v31  }
 0x2aa   : > { %v1651_v22 = vadd.f32 %v3703_v23, %v1628_v7 }
 0x2ab   : > { %v4067_v44 = vmov %v3744_v16  ;;  %v1258_v60 = vpop.f32.mrf.mxu2 }
 0x2ac   : > { %vm1669_vm14 = vcmp.ge.f32.partialorder %v1651_v22, 0.0  ;;  %v1687_v52 = vmul.f32 0.01, %v1651_v22  ;;  %v1291_v34 = vadd.f32 %v1258_v60, %v1145_v11 }
 0x2ad   : > { %v1146_v6 = vpop.f32.mrf.mxu1 }
 0x2ae   : > { %v1705_v38 = vsel %vm1669_vm14, %v1651_v22, %v1687_v52  ;;  %v1460_v56 = vadd.f32 %v1427_v32, %v1291_v34  ;;  %v1432_v61 = vpop.f32.mrf.mxu3  ;;  %v1147_v9 = vadd.f32 %v1146_v6, %v3627_v53 }
 0x2af   : > { %v1723_v4 = vmul.f32 %v1705_v38, %v2835_v48  ;;  %v1772_v48 = vmul.f32 (%p3812_p0), %v1753_v43, %v4061_v26 }
 0x2b0   : > { %v1629_v28 = vadd.f32 %v1596_v1, %v1460_v56  ;;  %v1603_v53 = vpop.f32.mrf.mxu0 }
 0x2b1   : > { %v3750_v33 = vadd.f32 %v2553_v33, %v1723_v4  }
 0x2b2   : > { %v1652_v16 = vadd.f32 %v3703_v23, %v1629_v28 }
 0x2b3   : > { %v4068_v49 = vmov %v3750_v33  ;;  %v1260_v13 = vpop.f32.mrf.mxu2 }
 0x2b4   : > { %vm1670_vm15 = vcmp.ge.f32.partialorder %v1652_v16, 0.0  ;;  %v1688_v0 = vmul.f32 0.01, %v1652_v16  ;;  %v1292_v20 = vadd.f32 %v1260_v13, %v1147_v9 }
 0x2b5   : > { %v1149_v35 = vpop.f32.mrf.mxu1 }
 0x2b6   : > { %v1706_v10 = vsel %vm1670_vm15, %v1652_v16, %v1688_v0  ;;  %v1461_v25 = vadd.f32 %v1429_v57, %v1292_v20  ;;  %v1434_v30 = vpop.f32.mrf.mxu3  ;;  %v1150_v12 = vadd.f32 %v1149_v35, %v3649_v62  ;;  %v4070_v57 = vld [vmem:[#allocation8_spill] sm:$0xff] }
 0x2b7   : > { %v1724_v32 = vmul.f32 %v1706_v10, %v2809_v40 }
 0x2b8   : > { %v1630_v47 = vadd.f32 %v1598_v29, %v1461_v25  ;;  %v1606_v28 = vpop.f32.mrf.mxu0 }
 0x2b9   : > { %v3756_v58 = vadd.f32 %v2549_v58, %v1724_v32  }
 0x2ba   : > { %v1653_v33 = vadd.f32 %v3703_v23, %v1630_v47 }
 0x2bb   : > { %v4069_v1 = vmov %v3756_v58  ;;  %v1263_v3 = vpop.f32.mrf.mxu2 }
 0x2bc   : > { %vm1671_vm0 = vcmp.ge.f32.partialorder %v1653_v33, 0.0  ;;  %v1689_v59 = vmul.f32 0.01, %v1653_v33  ;;  %v1293_v31 = vadd.f32 %v1263_v3, %v1150_v12 }
 0x2bd   : > { %v1151_v7 = vpop.f32.mrf.mxu1 }
 0x2be   : > { %v1707_v22 = vsel %vm1671_vm0, %v1653_v33, %v1689_v59  ;;  %v1462_v11 = vadd.f32 %v1432_v61, %v1293_v31  ;;  %v1152_v29 = vadd.f32 %v1151_v7, %v3663_v21  ;;  %v1437_v62 = vpop.f32.mrf.mxu3 }
 0x2bf   : > { %v1725_v60 = vmul.f32 %v1707_v22, %v4070_v57  ;;  %v4074_v57 = vld [vmem:[#allocation9_spill] sm:$0xff] }
 0x2c0   : > { %v1631_v52 = vadd.f32 %v1601_v27, %v1462_v11  ;;  %v1608_v33 = vpop.f32.mrf.mxu0 }
 0x2c1   : > { %v3762_v8 = vadd.f32 %v2545_v8, %v1725_v60  }
 0x2c2   : > { %v1654_v58 = vadd.f32 %v3703_v23, %v1631_v52 }
 0x2c3   : > { %v4071_v56 = vmov %v3762_v8  ;;  %v1265_v34 = vpop.f32.mrf.mxu2 }
 0x2c4   : > { %vm1672_vm1 = vcmp.ge.f32.partialorder %v1654_v58, 0.0  ;;  %v1690_v6 = vmul.f32 0.01, %v1654_v58  ;;  %v1294_v38 = vadd.f32 %v1265_v34, %v1152_v29 }
 0x2c5   : > { %v1154_v4 = vpop.f32.mrf.mxu1 }
 0x2c6   : > { %v1708_v16 = vsel %vm1672_vm1, %v1654_v58, %v1690_v6  ;;  %v1463_v9 = vadd.f32 %v1434_v30, %v1294_v38  ;;  %v1155_v27 = vadd.f32 %v1154_v4, %v3680_v18  ;;  %v1439_v25 = vpop.f32.mrf.mxu3 }
 0x2c7   : > { %v1726_v61 = vmul.f32 %v1708_v16, %v2842_v51  ;;  %v1796_v51 = vsel (%p3812_p0), %vm982_vm3, %v1776_v45, 0.0 }
 0x2c8   : > { %v1632_v13 = vadd.f32 %v1603_v53, %v1463_v9  ;;  %v1611_v29 = vpop.f32.mrf.mxu0 }
 0x2c9   : > { %v3768_v54 = vadd.f32 %v2541_v54, %v1726_v61  }
 0x2ca   : > { %v1655_v8 = vadd.f32 %v3703_v23, %v1632_v13 }
 0x2cb   : > { %v4072_v0 = vmov %v3768_v54  ;;  %v1268_v21 = vpop.f32.mrf.mxu2 }
 0x2cc   : > { %vm1673_vm2 = vcmp.ge.f32.partialorder %v1655_v8, 0.0  ;;  %v1691_v20 = vmul.f32 0.01, %v1655_v8  ;;  %v1295_v35 = vadd.f32 %v1268_v21, %v1155_v27  ;;  %v4077_v27 = vld [vmem:[#allocation16_spill] sm:$0xff] }
 0x2cd   : > { %v1156_v10 = vpop.f32.mrf.mxu1 }
 0x2ce   : > { %v1709_v32 = vsel %vm1673_vm2, %v1655_v8, %v1691_v20  ;;  %v1464_v47 = vadd.f32 %v1437_v62, %v1295_v35  ;;  %v1157_v53 = vadd.f32 %v1156_v10, %v3691_v17  ;;  %v1442_v52 = vpop.f32.mrf.mxu3 }
 0x2cf   : > { %v1727_v30 = vmul.f32 %v1709_v32, %v2814_v41 }
 0x2d0   : > { %v1633_v12 = vadd.f32 %v1606_v28, %v1464_v47  ;;  %v1613_v20 = vpop.f32.mrf.mxu0 }
 0x2d1   : > { %v3774_v15 = vadd.f32 %v2537_v15, %v1727_v30   ;;  %v4078_v30 = vld [vmem:[#allocation5_spill] sm:$0xff] }
 0x2d2   : > { %v1656_v54 = vadd.f32 %v3703_v23, %v1633_v12 }
 0x2d3   : > { %v4073_v3 = vmov %v3774_v15  ;;  %v1270_v18 = vpop.f32.mrf.mxu2 }
 0x2d4   : > { %vm1674_vm4 = vcmp.ge.f32.partialorder %v1656_v54, 0.0  ;;  %v1692_v59 = vmul.f32 0.01, %v1656_v54  ;;  %v1296_v31 = vadd.f32 %v1270_v18, %v1157_v53  ;;  %v4081_v18 = vld [vmem:[#allocation17_spill] sm:$0xff] }
 0x2d5   : > { %v1159_v7 = vpop.f32.mrf.mxu1 }
 0x2d6   : > { %v1710_v22 = vsel %vm1674_vm4, %v1656_v54, %v1692_v59  ;;  %v1465_v11 = vadd.f32 %v1439_v25, %v1296_v31  ;;  %v1160_v34 = vadd.f32 %v1159_v7, %v3617_v50  ;;  %v1444_v8 = vpop.f32.mrf.mxu3  ;;  %v4079_v54 = vld [vmem:[#allocation15_spill] sm:$0xff] }
 0x2d7   : > { %v1728_v60 = vmul.f32 %v1710_v22, %v4074_v57 }
 0x2d8   : > { %v1634_v58 = vadd.f32 %v1608_v33, %v1465_v11  ;;  %v1616_v57 = vpop.f32.mrf.mxu0 }
 0x2d9   : > { %v3780_v63 = vadd.f32 %v2533_v63, %v1728_v60  }
 0x2da   : > { %v1657_v15 = vadd.f32 %v3703_v23, %v1634_v58  ;;  %v4082_v58 = vld [vmem:[#allocation11_spill] sm:$0xff] }
 0x2db   : > { %v4075_v62 = vmov %v3780_v63  ;;  %v1273_v17 = vpop.f32.mrf.mxu2 }
 0x2dc   : > { %vm1675_vm5 = vcmp.ge.f32.partialorder %v1657_v15, 0.0  ;;  %v1693_v6 = vmul.f32 0.01, %v1657_v15  ;;  %v1297_v38 = vadd.f32 %v1273_v17, %v1160_v34  ;;  %v4083_v17 = vld [vmem:[#allocation14_spill] sm:$0xff] }
 0x2dd   : > { %v1161_v4 = vpop.f32.mrf.mxu1 }
 0x2de   : > { %v1711_v28 = vsel %vm1675_vm5, %v1657_v15, %v1693_v6  ;;  %v1466_v16 = vadd.f32 %v1442_v52, %v1297_v38  ;;  %v1162_v21 = vadd.f32 %v1161_v4, %v4077_v27  ;;  %v1447_v31 = vpop.f32.mrf.mxu3  ;;  %v4085_v38 = vld [vmem:[#allocation18_spill] sm:$0xff] }
 0x2df   : > { %v1729_v9 = vmul.f32 %v1711_v28, %v2849_v55  ;;  %v1790_v55 = vsel (%p3812_p0), %vm982_vm3, %v1774_v46, 0.0 }
 0x2e0   : > { %v1635_v61 = vadd.f32 %v1611_v29, %v1466_v16 }
 0x2e1   : > { %v3786_v14 = vadd.f32 %v2529_v14, %v1729_v9  }
 0x2e2   : > { %v1658_v63 = vadd.f32 %v3703_v23, %v1635_v61 }
 0x2e3   : > { %v4076_v13 = vmov %v3786_v14  ;;  %v1275_v50 = vpop.f32.mrf.mxu2 }
 0x2e4   : > { %vm1676_vm6 = vcmp.ge.f32.partialorder %v1658_v63, 0.0  ;;  %v1694_v35 = vmul.f32 0.01, %v1658_v63  ;;  %v1298_v10 = vadd.f32 %v1275_v50, %v1162_v21  ;;  %v4086_v21 = vld [vmem:[#allocation10_spill] sm:$0xff]  ;;  %v1618_v50 = vpop.f32.mrf.mxu0 }
 0x2e5   : > { %v1164_v25 = vpop.f32.mrf.mxu1 }
 0x2e6   : > { %v1712_v32 = vsel %vm1676_vm6, %v1658_v63, %v1694_v35  ;;  %v1467_v47 = vadd.f32 %v1444_v8, %v1298_v10  ;;  %v1165_v59 = vadd.f32 %v1164_v25, %v4081_v18  ;;  %v1449_v8 = vpop.f32.mrf.mxu3  ;;  %v4087_v10 = vld [vmem:[#allocation13_spill] sm:$0xff] }
 0x2e7   : > { %v1730_v33 = vmul.f32 %v1712_v32, %v4078_v30 }
 0x2e8   : > { %v1636_v12 = vadd.f32 %v1613_v20, %v1467_v47 }
 0x2e9   : > { %v3792_v30 = vadd.f32 %v4079_v54, %v1730_v33   ;;  %v4089_v33 = vld [vmem:[#allocation6_spill] sm:$0xff]  ;;  %v4090_v54 = vld [vmem:[#allocation12_spill] sm:$0xff] }
 0x2ea   : > { %v1659_v14 = vadd.f32 %v3703_v23, %v1636_v12 }
 0x2eb   : > { %v4080_v53 = vmov %v3792_v30  ;;  %v1278_v7 = vpop.f32.mrf.mxu2 }
 0x2ec   : > { %vm1677_vm7 = vcmp.ge.f32.partialorder %v1659_v14, 0.0  ;;  %v1695_v22 = vmul.f32 0.01, %v1659_v14  ;;  %v1299_v11 = vadd.f32 %v1278_v7, %v1165_v59  ;;  %v1754_v59 = vld [vmem:[%s4032_s6 + $0x10] sm:$0xff] (%p3812_p0) }
 0x2ed   : > { %v1166_v15 = vpop.f32.mrf.mxu1 }
 0x2ee   : > { %v1713_v60 = vsel %vm1677_vm7, %v1659_v14, %v1695_v22  ;;  %v1468_v52 = vadd.f32 %v1447_v31, %v1299_v11  ;;  %v1167_v28 = vadd.f32 %v1166_v15, %v4085_v38  ;;  %v4097_v14 = vmov %v4076_v13  ;;  %v1752_v31 = vld [vmem:[%s4032_s6] sm:$0xff] (%p3812_p0) }
 0x2ef   : > { %v1731_v29 = vmul.f32 %v1713_v60, %v4082_v58  ;;  %v4099_v15 = vmov %v4073_v3  ;;  %v4102_v58 = vmov %v4069_v1  ;;  %v4105_v11 = vmov %v4065_v2  ;;  %v3918_v60 = vld [vmem:[%s4032_s6 + $0x38] sm:$0xff] (%p3812_p0) }
 0x2f0   : > { %v1637_v34 = vadd.f32 %v1616_v57, %v1468_v52  ;;  %v4109_v38 = vmov %v4061_v26  ;;  %v1773_v22 = vmul.f32 (%p3812_p0), %v1754_v59, %v4062_v24  ;;  %v1771_v57 = vmul.f32 (%p3812_p0), %v1752_v31, %v4060_v36  ;;  %v3913_v11 = vld [vmem:[%s4032_s6 + $0x40] sm:$0xff] (%p3812_p0)  ;;  %v3923_v52 = vld [vmem:[%s4032_s6 + $0x30] sm:$0xff] (%p3812_p0) }
 0x2f1   : > { %v3798_v29 = vadd.f32 %v4083_v17, %v1731_v29   ;;  %v1784_v14 = vsel (%p3812_p0), %vm982_vm3, %v1772_v48, 0.0  ;;  %v1779_v58 = vmul.f32 (%p3812_p0), %v3913_v11, %v4069_v1  ;;  %v1777_v15 = vmul.f32 (%p3812_p0), %v3923_v52, %v4067_v44  ;;  %v2192_v38 = vld [vmem:[%s4032_s6 + $0x50] sm:$0xff] (%p3812_p0)  ;;  %v2197_v48 = vld [vmem:[%s4032_s6 + $0x78] sm:$0xff] (%p3812_p0) }
 0x2f2   : > { %v1660_v6 = vadd.f32 %v3703_v23, %v1637_v34  ;;  %v4107_v34 = vmov %v4063_v5  ;;  %v1787_v41 = vsel (%p3812_p0), %vm982_vm3, %v1773_v22, 0.0  ;;  %v1781_v42 = vsel (%p3812_p0), %vm982_vm3, %v1771_v57, 0.0  ;;  %v2195_v22 = vld [vmem:[%s4032_s6 + $0x68] sm:$0xff] (%p3812_p0) }
 0x2f3   : > { %v4084_v4 = vmov %v3798_v29  ;;  %v1280_v16 = vpop.f32.mrf.mxu2  ;;  %1788 = vadd.xlane.f32.xlu1 (%p3812_p0), %v1787_v41  ;;  %1782 = vadd.xlane.f32.xlu0 (%p3812_p0), %v1781_v42  ;;  %v1805_v34 = vsel (%p3812_p0), %vm982_vm3, %v1779_v58, 0.0  ;;  %v1928_v57 = vmul.f32 (%p3812_p0), %v2195_v22, %v4076_v13  ;;  %v2196_v42 = vld [vmem:[%s4032_s6 + $0x70] sm:$0xff] (%p3812_p0)  ;;  %v2198_v58 = vld [vmem:[%s4032_s6 + $0x80] sm:$0xff] (%p3812_p0) }
 0x2f4   : > { %vm1678_vm8 = vcmp.ge.f32.partialorder %v1660_v6, 0.0  ;;  %v1696_v9 = vmul.f32 0.01, %v1660_v6  ;;  %v1300_v61 = vadd.f32 %v1280_v16, %v1167_v28  ;;  %v4095_v29 = vmov %v4084_v4  ;;  %v2191_v28 = vld [vmem:[%s4032_s6 + $0x48] sm:$0xff] (%p3812_p0) }
 0x2f5   : > { %v4104_v16 = vmov %v4067_v44  ;;  %v1778_v29 = vmul.f32 (%p3812_p0), %v3918_v60, %v4068_v49 }
 0x2f6   : > { %v1714_v63 = vsel %vm1678_vm8, %v1660_v6, %v1696_v9  ;;  %v1469_v27 = vadd.f32 %v1449_v8, %v1300_v61  ;;  %v4101_v8 = vmov %v4071_v56  ;;  %v1823_v16 = vmul.f32 (%p3812_p0), %v2192_v38, %v4061_v26 }
 0x2f7   : > { %v1732_v20 = vmul.f32 %v1714_v63, %v4086_v21  ;;  %v4098_v63 = vmov %v4075_v62  ;;  %v1802_v17 = vsel (%p3812_p0), %vm982_vm3, %v1778_v29, 0.0  ;;  %v1822_v61 = vmul.f32 (%p3812_p0), %v2191_v28, %v4060_v36 }
 0x2f8   : > { %v1638_v35 = vadd.f32 %v1618_v50, %v1469_v27  ;;  %v4110_v27 = vmov %v4060_v36  ;;  %v1834_v8 = vsel (%p3812_p0), %vm982_vm3, %v1823_v16, 0.0  ;;  %v1924_v21 = vmul.f32 (%p3812_p0), %v2191_v28, %v4071_v56 }
 0x2f9   : > { %v3804_v9 = vadd.f32 %v4087_v10, %v1732_v20   ;;  %v1831_v27 = vsel (%p3812_p0), %vm982_vm3, %v1822_v61, 0.0  ;;  %v1925_v20 = vmul.f32 (%p3812_p0), %v2192_v38, %v4072_v0  ;;  %v1875_v50 = vmul.f32 (%p3812_p0), %v1753_v43, %v4072_v0  ;;  %v2193_v10 = vld [vmem:[%s4032_s6 + $0x58] sm:$0xff] (%p3812_p0) }
 0x2fa   : > { %v1661_v32 = vadd.f32 %v3703_v23, %v1638_v35  ;;  %v4106_v35 = vmov %v4064_v19  ;;  %v3877_v23 = vld [vmem:[%s4032_s6 + $0x20] sm:$0xff] (%p3812_p0)  ;;  %v1933_v26 = vsel (%p3812_p0), %vm982_vm3, %v1924_v21, 0.0  ;;  %v1929_v43 = vmul.f32 (%p3812_p0), %v2196_v42, %v4080_v53 }
 0x2fb   : > { %v4088_v25 = vmov %v3804_v9  ;;  %v1775_v7 = vmul.f32 (%p3812_p0), %v3877_v23, %v4064_v19  ;;  %1791 = vadd.xlane.f32.xlu1 (%p3812_p0), %v1790_v55  ;;  %1785 = vadd.xlane.f32.xlu0 (%p3812_p0), %v1784_v14  ;;  %v1936_v35 = vsel (%p3812_p0), %vm982_vm3, %v1925_v20, 0.0  ;;  %v1886_v36 = vsel (%p3812_p0), %vm982_vm3, %v1875_v50, 0.0 }
 0x2fc   : > { %vm1679_vm9 = vcmp.ge.f32.partialorder %v1661_v32, 0.0  ;;  %v1697_v47 = vmul.f32 0.01, %v1661_v32  ;;  %v4094_v9 = vmov %v4088_v25  ;;  %v1931_v29 = vmul.f32 (%p3812_p0), %v2198_v58, %v4088_v25 }
 0x2fd   :  { %v1793_v40 = vsel (%p3812_p0), %vm982_vm3, %v1775_v7, 0.0  ;;  %v1874_v9 = vmul.f32 (%p3812_p0), %v1752_v31, %v4071_v56  ;;  %v1824_v56 = vmul.f32 (%p3812_p0), %v2193_v10, %v4062_v24 }
 0x2fe   : > { %v1715_v30 = vsel %vm1679_vm9, %v1661_v32, %v1697_v47  ;;  %v4108_v47 = vmov %v4062_v24  ;;  %1794 = vadd.xlane.f32.xlu2 (%p3812_p0), %v1793_v40  ;;  %v1926_v32 = vmul.f32 (%p3812_p0), %v2193_v10, %v4073_v3  ;;  %v1877_v24 = vmul.f32 (%p3812_p0), %v1755_v39, %v4075_v62 }
 0x2ff   : > { %v1733_v12 = vmul.f32 %v1715_v30, %v4089_v33  ;;  %v4096_v30 = vmov %v4080_v53  ;;  %v4103_v33 = vmov %v4068_v49  ;;  %v1883_v63 = vsel (%p3812_p0), %vm982_vm3, %v1874_v9, 0.0 }
 0x300   :  { %801 = sbr.rel (!%p3812_p0) target bundleno = 421 (0x1a5), region = 62  ;;  %v1876_v47 = vmul.f32 (%p3812_p0), %v1754_v59, %v4073_v3  ;;  %v1837_v30 = vsel (%p3812_p0), %vm982_vm3, %v1824_v56, 0.0  ;;  %v1892_v7 = vsel (%p3812_p0), %vm982_vm3, %v1877_v24, 0.0  ;;  %v1826_v40 = vmul.f32 (%p3812_p0), %v2195_v22, %v4064_v19 }
 0x301   : > { %v3809_v6 = vadd.f32 %v4090_v54, %v1733_v12   ;;  %v4100_v54 = vmov %v4072_v0  ;;  %v1939_v0 = vsel (%p3812_p0), %vm982_vm3, %v1926_v32, 0.0  ;;  %v2194_v12 = vld [vmem:[%s4032_s6 + $0x60] sm:$0xff] (%p3812_p0)  ;;  %v1827_v19 = vmul.f32 (%p3812_p0), %v2196_v42, %v4065_v2 }
 0x302   :  { %v1889_v33 = vsel (%p3812_p0), %vm982_vm3, %v1876_v47, 0.0  ;;  %v1927_v54 = vmul.f32 (%p3812_p0), %v2194_v12, %v4075_v62  ;;  %v1825_v31 = vmul.f32 (%p3812_p0), %v2194_v12, %v4063_v5  ;;  %v1878_v5 = vmul.f32 (%p3812_p0), %v3877_v23, %v4076_v13 }
 0x303   : > { %v4091_v18 = vmov %v3809_v6  ;;  %1803 = vadd.xlane.f32.xlu1 (%p3812_p0), %v1802_v17  ;;  %v1945_v62 = vsel (%p3812_p0), %vm982_vm3, %v1928_v57, 0.0  ;;  %v1843_v39 = vsel (%p3812_p0), %vm982_vm3, %v1826_v40, 0.0  ;;  %v1879_v13 = vmul.f32 (%p3812_p0), %v3892_v37, %v4080_v53  ;;  %v2199_v17 = vld [vmem:[%s4032_s6 + $0x88] sm:$0xff] (%p3812_p0) }
 0x304   : > { %v4093_v6 = vmov %v4091_v18  ;;  %v1942_v3 = vsel (%p3812_p0), %vm982_vm3, %v1927_v54, 0.0  ;;  %v1840_v59 = vsel (%p3812_p0), %vm982_vm3, %v1825_v31, 0.0  ;;  %v1895_v41 = vsel (%p3812_p0), %vm982_vm3, %v1878_v5, 0.0 }
 0x305   :  { %v1799_v6 = vsel %vm982_vm3, %v1777_v15, 0.0  ;;  %v1948_v23 = vsel %vm982_vm3, %v1929_v43, 0.0  ;;  %v1846_v45 = vsel %vm982_vm3, %v1827_v19, 0.0  ;;  %v1898_v46 = vsel %vm982_vm3, %v1879_v13, 0.0 }
 0x306   :  { %1797 = vadd.xlane.f32.xlu2 %v1796_v51  ;;  %1800 = vadd.xlane.f32.xlu0 %v1799_v6  ;;  %v1930_v51 = vmul.f32 %v2197_v48, %v4084_v4  ;;  %v1828_v2 = vmul.f32 %v2197_v48, %v4067_v44  ;;  %v1880_v53 = vmul.f32 %v3923_v52, %v4084_v4  ;;  %v1954_v52 = vsel %vm982_vm3, %v1931_v29, 0.0 }
 0x307   :  { %v1829_v44 = vmul.f32 %v2198_v58, %v4068_v49  ;;  %v1881_v4 = vmul.f32 %v3918_v60, %v4088_v25  ;;  %v1932_v6 = vmul.f32 %v2199_v17, %v4091_v18  ;;  %v1830_v49 = vmul.f32 %v2199_v17, %v4069_v1 }
 0x308   :  { %v1951_v37 = vsel %vm982_vm3, %v1930_v51, 0.0  ;;  %v1849_v55 = vsel %vm982_vm3, %v1828_v2, 0.0  ;;  %v1901_v14 = vsel %vm982_vm3, %v1880_v53, 0.0  ;;  %v1882_v25 = vmul.f32 %v3913_v11, %v4091_v18 }
 0x309   :  { %v1852_v15 = vsel %vm982_vm3, %v1829_v44, 0.0  ;;  %v1957_v60 = vsel %vm982_vm3, %v1932_v6, 0.0  ;;  %v1855_v38 = vsel %vm982_vm3, %v1830_v49, 0.0 }
 0x30a   :  { %v1907_v28 = vsel %vm982_vm3, %v1882_v25, 0.0 }
 0x30b   :  { %1835 = vadd.xlane.f32.xlu1 %v1834_v8 }
 0x30e   :  { %1806 = vadd.xlane.f32.xlu2 %v1805_v34  ;;  %1832 = vadd.xlane.f32.xlu0 %v1831_v27  ;;  %v1904_v34 = vsel %vm982_vm3, %v1881_v4, 0.0  ;;  %vm1872_vm3 = vcmask 7168  }
 0x313   :  { %1934 = vadd.xlane.f32.xlu1 %v1933_v26 }
 0x316   :  { %1884 = vadd.xlane.f32.xlu2 %v1883_v63  ;;  %1887 = vadd.xlane.f32.xlu0 %v1886_v36 }
 0x31b   :  { %1940 = vadd.xlane.f32.xlu1 %v1939_v0 }
 0x31e   :  { %1937 = vadd.xlane.f32.xlu2 %v1936_v35  ;;  %1890 = vadd.xlane.f32.xlu0 %v1889_v33 }
 0x323   :  { %1943 = vadd.xlane.f32.xlu1 %v1942_v3 }
 0x326   :  { %1838 = vadd.xlane.f32.xlu2 %v1837_v30  ;;  %1893 = vadd.xlane.f32.xlu0 %v1892_v7 }
 0x32b   :  { %1946 = vadd.xlane.f32.xlu1 %v1945_v62 }
 0x32e   :  { %1841 = vadd.xlane.f32.xlu2 %v1840_v59  ;;  %1896 = vadd.xlane.f32.xlu0 %v1895_v41 }
 0x333   :  { %1949 = vadd.xlane.f32.xlu1 %v1948_v23 }
 0x336   :  { %1844 = vadd.xlane.f32.xlu2 %v1843_v39  ;;  %1899 = vadd.xlane.f32.xlu0 %v1898_v46 }
 0x33b   :  { %1952 = vadd.xlane.f32.xlu1 %v1951_v37 }
 0x33e   :  { %1847 = vadd.xlane.f32.xlu2 %v1846_v45  ;;  %1902 = vadd.xlane.f32.xlu0 %v1901_v14 }
 0x343   :  { %1955 = vadd.xlane.f32.xlu1 %v1954_v52 }
 0x346   :  { %1850 = vadd.xlane.f32.xlu2 %v1849_v55  ;;  %1905 = vadd.xlane.f32.xlu0 %v1904_v34 }
 0x34b   :  { %1958 = vadd.xlane.f32.xlu1 %v1957_v60 }
 0x34e   :  { %1853 = vadd.xlane.f32.xlu2 %v1852_v15  ;;  %1908 = vadd.xlane.f32.xlu0 %v1907_v28 }
 0x356   :  { %1856 = vadd.xlane.f32.xlu2 %v1855_v38 }
 0x366   :  { %v1789_v9 = vpop.xlane.xlu1 %1788  ;;  %v1783_v61 = vpop.xlane.xlu0 %1782 }
 0x36e   :  { %v1792_v63 = vpop.xlane.xlu1 %1791  ;;  %v1786_v27 = vpop.xlane.xlu0 %1785 }
 0x36f   :  { %v1808_v21 = vadd.f32 %v1786_v27, %v1783_v61 }
 0x371   :  { %v1795_v16 = vpop.xlane.xlu2 %1794  ;;  %v1809_v1 = vadd.f32 %v1808_v21, %v1789_v9 }
 0x373   :  { %v1810_v20 = vadd.f32 %v1809_v1, %v1792_v63 }
 0x375   :  { %v1811_v11 = vadd.f32 %v1810_v20, %v1795_v16 }
 0x376   :  { %v1804_v18 = vpop.xlane.xlu1 %1803 }
 0x379   :  { %v1798_v8 = vpop.xlane.xlu2 %1797  ;;  %v1801_v26 = vpop.xlane.xlu0 %1800 }
 0x37a   :  { %v1812_v35 = vadd.f32 %v1811_v11, %v1798_v8 }
 0x37c   :  { %v1813_v36 = vadd.f32 %v1812_v35, %v1801_v26 }
 0x37e   :  { %v1814_v10 = vadd.f32 %v1813_v36, %v1804_v18  ;;  %v1836_v56 = vpop.xlane.xlu1 %1835 }
 0x381   :  { %v1807_v50 = vpop.xlane.xlu2 %1806  ;;  %v1833_v0 = vpop.xlane.xlu0 %1832 }
 0x382   :  { %v1815_v32 = vadd.f32 %v1814_v10, %v1807_v50  ;;  %v1858_v19 = vadd.f32 %v1836_v56, %v1833_v0 }
 0x384   :  { %v1816_v15 = vrot.slane %v1815_v32, 4 }
 0x386   :  { %v1935_v30 = vpop.xlane.xlu1 %1934  ;;  %v1817_v38 = vadd.f32 %v1816_v15, %v1815_v32 }
 0x388   :  { %v1818_v20 = vrot.slane %v1817_v38, 2 }
 0x389   :  { %v1885_v47 = vpop.xlane.xlu2 %1884  ;;  %v1888_v12 = vpop.xlane.xlu0 %1887 }
 0x38a   :  { %v1910_v23 = vadd.f32 %v1888_v12, %v1885_v47  ;;  %v1819_v10 = vadd.f32 %v1818_v20, %v1817_v38 }
 0x38c   :  { %v1820_v12 = vrot.slane %v1819_v10, 1 }
 0x38e   :  { %v1941_v54 = vpop.xlane.xlu1 %1940 }
 0x391   :  { %v1938_v33 = vpop.xlane.xlu2 %1937  ;;  %v1891_v24 = vpop.xlane.xlu0 %1890 }
 0x392   :  { %v1960_v13 = vadd.f32 %v1938_v33, %v1935_v30  ;;  %v1911_v48 = vadd.f32 %v1910_v23, %v1891_v24 }
 0x394   :  { %v1961_v45 = vadd.f32 %v1960_v13, %v1941_v54 }
 0x396   :  { %v1944_v3 = vpop.xlane.xlu1 %1943 }
 0x397   :  { %v1962_v51 = vadd.f32 %v1961_v45, %v1944_v3 }
 0x399   :  { %v1839_v31 = vpop.xlane.xlu2 %1838  ;;  %v1894_v7 = vpop.xlane.xlu0 %1893 }
 0x39a   :  { %v1859_v46 = vadd.f32 %v1858_v19, %v1839_v31  ;;  %v1912_v53 = vadd.f32 %v1911_v48, %v1894_v7 }
 0x39e   :  { %v1947_v22 = vpop.xlane.xlu1 %1946 }
 0x39f   :  { %v1963_v14 = vadd.f32 %v1962_v51, %v1947_v22  ;;  %v2408_v22 = vld [vmem:[%s4033_s7] ss:$0 sm:$0xff] }
 0x3a1   :  { %v1842_v59 = vpop.xlane.xlu2 %1841  ;;  %v1897_v40 = vpop.xlane.xlu0 %1896 }
 0x3a2   :  { %v1860_v2 = vadd.f32 %v1859_v46, %v1842_v59  ;;  %v1913_v44 = vadd.f32 %v1912_v53, %v1897_v40  ;;  %v1821_v59 = vadd.f32 %v1820_v12, %v1819_v10 }
 0x3a6   :  { %v1950_v5 = vpop.xlane.xlu1 %1949 }
 0x3a7   :  { %v1964_v4 = vadd.f32 %v1963_v14, %v1950_v5 }
 0x3a9   :  { %v1845_v57 = vpop.xlane.xlu2 %1844  ;;  %v1900_v39 = vpop.xlane.xlu0 %1899 }
 0x3aa   :  { %v1861_v58 = vadd.f32 %v1860_v2, %v1845_v57  ;;  %v1914_v34 = vadd.f32 %v1913_v44, %v1900_v39 }
 0x3ae   :  { %v1953_v41 = vpop.xlane.xlu1 %1952 }
 0x3af   :  { %v1965_v17 = vadd.f32 %v1964_v4, %v1953_v41 }
 0x3b1   :  { %v1848_v62 = vpop.xlane.xlu2 %1847  ;;  %v1903_v43 = vpop.xlane.xlu0 %1902 }
 0x3b2   :  { %v1862_v52 = vadd.f32 %v1861_v58, %v1848_v62  ;;  %v1915_v49 = vadd.f32 %v1914_v34, %v1903_v43 }
 0x3b6   :  { %v1956_v37 = vpop.xlane.xlu1 %1955 }
 0x3b7   :  { %v1966_v25 = vadd.f32 %v1965_v17, %v1956_v37 }
 0x3b9   :  { %v1851_v42 = vpop.xlane.xlu2 %1850  ;;  %v1906_v29 = vpop.xlane.xlu0 %1905 }
 0x3ba   :  { %v1863_v6 = vadd.f32 %v1862_v52, %v1851_v42  ;;  %v1916_v28 = vadd.f32 %v1915_v49, %v1906_v29 }
 0x3be   :  { %v1959_v16 = vpop.xlane.xlu1 %1958 }
 0x3bf   :  { %v1967_v61 = vadd.f32 %v1966_v25, %v1959_v16 }
 0x3c1   :  { %v1854_v55 = vpop.xlane.xlu2 %1853  ;;  %v1909_v63 = vpop.xlane.xlu0 %1908  ;;  %v1968_v21 = vrot.slane %v1967_v61, 4 }
 0x3c2   :  { %v1864_v60 = vadd.f32 %v1863_v6, %v1854_v55  ;;  %v1917_v27 = vadd.f32 %v1916_v28, %v1909_v63 }
 0x3c3   :  { %v1969_v18 = vadd.f32 %v1968_v21, %v1967_v61 }
 0x3c4   :  { %v1918_v50 = vrot.slane %v1917_v27, 4 }
 0x3c5   :  { %v1970_v35 = vrot.slane %v1969_v18, 2 }
 0x3c6   :  { %v1919_v26 = vadd.f32 %v1918_v50, %v1917_v27 }
 0x3c7   :  { %v1971_v47 = vadd.f32 %v1970_v35, %v1969_v18 }
 0x3c8   :  { %v1920_v56 = vrot.slane %v1919_v26, 2 }
 0x3c9   :  { %v1857_v9 = vpop.xlane.xlu2 %1856  ;;  %v1972_v30 = vrot.slane %v1971_v47, 1 }
 0x3ca   :  { %v1865_v8 = vadd.f32 %v1864_v60, %v1857_v9  ;;  %v1921_v0 = vadd.f32 %v1920_v56, %v1919_v26 }
 0x3cb   :  { %v1973_v31 = vadd.f32 %v1972_v30, %v1971_v47 }
 0x3cc   :  { %v1866_v1 = vrot.slane %v1865_v8, 4  ;;  %v1922_v54 = vrot.slane %v1921_v0, 1 }
 0x3ce   :  { %v1867_v11 = vadd.f32 %v1866_v1, %v1865_v8  ;;  %v1923_v3 = vadd.f32 %v1922_v54, %v1921_v0 }
 0x3d0   :  { %v1868_v36 = vrot.slane %v1867_v11, 2  ;;  %v1974_v7 = vsel %vm1872_vm3, %v1923_v3, %v1973_v31 }
 0x3d1   :  { %v1976_v57 = vrot.slane %v1974_v7, 7 }
 0x3d2   :  { %v1869_v32 = vadd.f32 %v1868_v36, %v1867_v11 }
 0x3d4   :  { %v1870_v33 = vrot.slane %v1869_v32, 1 }
 0x3d6   :  { %v1871_v24 = vadd.f32 %v1870_v33, %v1869_v32 }
 0x3d8   :  { %v1873_v40 = vsel %vm1872_vm3, %v1821_v59, %v1871_v24 }
 0x3d9   :  { %v1979_v5 = vsel %vm1978_vm10, %v1873_v40, %v1976_v57 }
 0x3da   :  { %v1984_v62 = vadd.f32 %v2408_v22, %v1979_v5 }
 0x3dc   :  { %1986 = vst.msk [vmem:[#allocation2] sm:$0x3] %vm1985_vm11, %v1984_v62 }
 0x3dd   :  { %1997 = dma.vmem_to_hbm [thread:$0]  %s1993_s28, 32, %s1995_s0, [#allocation3]  }
 0x3de   :  { %2509 = dma.done.wait [#allocation3], 32  }
 0x3df   :  { %2510 = vsyncadd [#allocation3], 4294967264 }
 0x3e0   :  { %2002 = vsyncpa [#allocation3], 1 }

</bundles_post_ra>
